<compile_context>
chip_gen: v7x
topology: tpu7x:2x2x1
jax: 0.10.0
libtpu: 0.0.40
codegen_flags: <defaults>
</compile_context>

<pallas_src>
import math
import numpy as np

import jax
import jax.numpy as jnp
from jax import lax
from jax.experimental import pallas as pl
from jax.experimental.pallas import tpu as pltpu


_INV_SQRT2 = 1.0 / math.sqrt(2.0)


def _upsample_matrix(n, scale=2):
    """1-D bilinear interpolation matrix (n*scale, n) matching PyTorch
    nn.Upsample(mode='bilinear', align_corners=False)."""
    m = n * scale
    A = np.zeros((m, n), dtype=np.float32)
    for o in range(m):
        src = (o + 0.5) / scale - 0.5
        src = max(src, 0.0)                       # PyTorch clamps negative coords
        i0 = min(int(math.floor(src)), n - 1)
        i1 = i0 + 1 if i0 < n - 1 else i0
        lam = src - i0
        A[o, i0] += 1.0 - lam
        A[o, i1] += lam
    return A


def _fused_upsample_kernel(w_ref, shift_ref, x_ref, ah_ref, awt_ref, o_ref):
    """One batch element per grid step.

    w_ref     : SMEM (C_out, C_in)    conv weights with BN scale folded in
    shift_ref : SMEM (C_out, 1)       folded BN shift
    x_ref     : VMEM (C_in, H, W)     input slice (leading N dim squeezed)
    ah_ref    : VMEM (2H, H)          row-interp matrix (grid-resident)
    awt_ref   : VMEM (W, 2W)          col-interp matrix, transposed (grid-resident)
    o_ref     : VMEM (C_out, 2H, 2W)  output slice (leading N dim squeezed)
    """
    c_in = x_ref.shape[0]
    c_out = o_ref.shape[0]

    # Load each input plane once; keep W on the lane axis throughout.
    x_planes = [x_ref[ci] for ci in range(c_in)]
    ah = ah_ref[...]
    awt = awt_ref[...]

    # NOTE: channel counts are small (4 -> 8) so the 1x1 conv is a VPU weighted
    # sum of planes with scalar weights from SMEM (no channels-last relayout,
    # MXU left free).  For large C_in/C_out this should become an MXU
    # (C_out, C_in) @ (C_in, H*W) matmul instead.
    for co in range(c_out):
        acc = x_planes[0] * w_ref[co, 0]
        for ci in range(1, c_in):
            acc = acc + x_planes[ci] * w_ref[co, ci]
        y = acc + shift_ref[co, 0]
        # exact GELU (nn.GELU default): 0.5 * y * (1 + erf(y / sqrt(2)))
        y = 0.5 * y * (1.0 + lax.erf(y * _INV_SQRT2))
        # separable bilinear x2: (H,W) @ (W,2W) -> (H,2W); (2H,H) @ (H,2W) -> (2H,2W)
        t = jnp.dot(y, awt, preferred_element_type=jnp.float32)
        up = jnp.dot(ah, t, preferred_element_type=jnp.float32)
        o_ref[co, :, :] = up.astype(o_ref.dtype)


def upsample_forward(x, w, gamma, beta, run_mean, run_var,
                     scale_factor=2, eps=1e-5):
    """x: (N, C_in, H, W) NCHW float32; w: (C_out, C_in, 1, 1)."""
    N, C_in, H, W = x.shape
    C_out = w.shape[0]
    H2, W2 = H * scale_factor, W * scale_factor

    # Fold inference BatchNorm into the 1x1 conv:  y = (scale*w) . x + shift
    inv_std = 1.0 / jnp.sqrt(run_var + eps)
    scale = gamma * inv_std                                            # (C_out,)
    w_eff = (w.reshape(C_out, C_in) * scale[:, None]).astype(jnp.float32)
    shift = (beta - run_mean * scale).astype(jnp.float32).reshape(C_out, 1)

    # Separable bilinear interpolation matrices (half-pixel, edge-clamped).
    A_h = jnp.asarray(_upsample_matrix(H, scale_factor))               # (2H, H)
    A_wT = jnp.asarray(_upsample_matrix(W, scale_factor)).T            # (W, 2W)

    flops_per_plane = (2 * C_in * H * W          # conv weighted sum
                       + 2 * H * W * W2          # W-pass matmul
                       + 2 * H2 * H * W2)        # H-pass matmul
    cost = pl.CostEstimate(
        flops=N * C_out * flops_per_plane,
        transcendentals=N * C_out * H * W,       # erf per conv output element
        bytes_accessed=4 * (x.size + N * C_out * H2 * W2
                            + w_eff.size + shift.size + A_h.size + A_wT.size),
    )

    smem = pltpu.MemorySpace.SMEM
    return pl.pallas_call(
        _fused_upsample_kernel,
        out_shape=jax.ShapeDtypeStruct((N, C_out, H2, W2), jnp.float32),
        grid_spec=pltpu.PrefetchScalarGridSpec(
            num_scalar_prefetch=0,
            grid=(N,),
            in_specs=[
                pl.BlockSpec((C_out, C_in), lambda n: (0, 0), memory_space=smem),
                pl.BlockSpec((C_out, 1), lambda n: (0, 0), memory_space=smem),
                pl.BlockSpec((None, C_in, H, W), lambda n: (n, 0, 0, 0)),
                pl.BlockSpec((H2, H), lambda n: (0, 0)),
                pl.BlockSpec((W, W2), lambda n: (0, 0)),
            ],
            out_specs=pl.BlockSpec((None, C_out, H2, W2), lambda n: (n, 0, 0, 0)),
        ),
        compiler_params=pltpu.CompilerParams(
            dimension_semantics=("parallel",),   # shards batch across TCs on v7x
        ),
        cost_estimate=cost,
    )(w_eff, shift, x, A_h, A_wT)


# ---------------------------------------------------------------------------
# Demo / self-check
# ---------------------------------------------------------------------------
if __name__ == "__main__":
    key = jax.random.PRNGKey(0)
    k1, k2, k3, k4, k5, k6 = jax.random.split(key, 6)

    N, C_in, C_out, H, W = 2, 4, 8, 16, 16
    x = jax.random.normal(k1, (N, C_in, H, W), jnp.float32)
    w = jax.random.normal(k2, (C_out, C_in, 1, 1), jnp.float32) * 0.1
    gamma = 1.0 + 0.1 * jax.random.normal(k3, (C_out,), jnp.float32)
    beta = 0.1 * jax.random.normal(k4, (C_out,), jnp.float32)
    run_mean = 0.1 * jax.random.normal(k5, (C_out,), jnp.float32)
    run_var = jax.random.uniform(k6, (C_out,), jnp.float32, minval=0.5, maxval=1.5)

    out = upsample_forward(x, w, gamma, beta, run_mean, run_var)
    out = jax.block_until_ready(out)
    assert out.shape == (N, C_out, 2 * H, 2 * W), out.shape

    # pure-JAX reference (HIGHEST precision so the reference itself is accurate f32)
    y_ref = jnp.einsum("nchw,oc->nohw", x, w.reshape(C_out, C_in),
                       precision=lax.Precision.HIGHEST)
    inv_std = 1.0 / jnp.sqrt(run_var + 1e-5)
    sc = (gamma * inv_std)[None, :, None, None]
    sh = (beta - run_mean * gamma * inv_std)[None, :, None, None]
    y_ref = y_ref * sc + sh
    y_ref = 0.5 * y_ref * (1.0 + lax.erf(y_ref / jnp.sqrt(2.0)))
    A_h = jnp.asarray(_upsample_matrix(H, 2))
    A_w = jnp.asarray(_upsample_matrix(W, 2))
    ref = jnp.einsum("ph,nchw,qw->ncpq", A_h, y_ref, A_w,
                     precision=lax.Precision.HIGHEST)

    err = float(jnp.max(jnp.abs(out - ref)))
    # tolerance leaves headroom for possible bf16 MXU passes inside the kernel's
    # interpolation matmuls; genuine bugs produce errors orders of magnitude larger.
    assert jnp.allclose(out, ref, atol=2e-3, rtol=5e-3), err
    print("KERNEL_OK")
</pallas_src>

<mosaic_0001>
module attributes {stable_mosaic.version = 11 : i64} {
  func.func @_fused_upsample_kernel(%arg0: i32, %arg1: memref<8x4xf32, #tpu.memory_space<smem>>, %arg2: memref<8x1xf32, #tpu.memory_space<smem>>, %arg3: memref<1x4x16x16xf32, #tpu.memory_space<vmem>>, %arg4: memref<32x16xf32, #tpu.memory_space<vmem>>, %arg5: memref<16x32xf32, #tpu.memory_space<vmem>>, %arg6: memref<1x8x32x32xf32, #tpu.memory_space<vmem>>) attributes {dimension_semantics = [#tpu.dimension_semantics<parallel>], iteration_bounds = array<i64: 2>, scalar_prefetch = 0 : i64, scratch_operands = 0 : i64, tpu.core_type = #tpu.core_type<tc>, window_params = [{transform_indices = @transform_0, window_bounds = array<i64: 8, 4>}, {transform_indices = @transform_1, window_bounds = array<i64: 8, 1>}, {transform_indices = @transform_2, window_bounds = array<i64: 1, 4, 16, 16>}, {pipeline_mode = #tpu.pipeline_mode<synchronous>, transform_indices = @transform_3, window_bounds = array<i64: 32, 16>}, {pipeline_mode = #tpu.pipeline_mode<synchronous>, transform_indices = @transform_4, window_bounds = array<i64: 16, 32>}, {transform_indices = @transform_5, window_bounds = array<i64: 1, 8, 32, 32>}]} {
    %c0 = arith.constant 0 : index
    %c0_0 = arith.constant 0 : index
    %c0_1 = arith.constant 0 : index
    %c0_2 = arith.constant 0 : index
    %0 = vector.load %arg3[%c0, %c0_0, %c0_1, %c0_2] : memref<1x4x16x16xf32, #tpu.memory_space<vmem>>, vector<1x1x16x16xf32>
    %1 = vector.shape_cast %0 : vector<1x1x16x16xf32> to vector<16x16xf32>
    %c0_3 = arith.constant 0 : index
    %c1 = arith.constant 1 : index
    %c0_4 = arith.constant 0 : index
    %c0_5 = arith.constant 0 : index
    %2 = vector.load %arg3[%c0_3, %c1, %c0_4, %c0_5] : memref<1x4x16x16xf32, #tpu.memory_space<vmem>>, vector<1x1x16x16xf32>
    %3 = vector.shape_cast %2 : vector<1x1x16x16xf32> to vector<16x16xf32>
    %c0_6 = arith.constant 0 : index
    %c2 = arith.constant 2 : index
    %c0_7 = arith.constant 0 : index
    %c0_8 = arith.constant 0 : index
    %4 = vector.load %arg3[%c0_6, %c2, %c0_7, %c0_8] : memref<1x4x16x16xf32, #tpu.memory_space<vmem>>, vector<1x1x16x16xf32>
    %5 = vector.shape_cast %4 : vector<1x1x16x16xf32> to vector<16x16xf32>
    %c0_9 = arith.constant 0 : index
    %c3 = arith.constant 3 : index
    %c0_10 = arith.constant 0 : index
    %c0_11 = arith.constant 0 : index
    %6 = vector.load %arg3[%c0_9, %c3, %c0_10, %c0_11] : memref<1x4x16x16xf32, #tpu.memory_space<vmem>>, vector<1x1x16x16xf32>
    %7 = vector.shape_cast %6 : vector<1x1x16x16xf32> to vector<16x16xf32>
    %c0_12 = arith.constant 0 : index
    %c0_13 = arith.constant 0 : index
    %8 = vector.load %arg4[%c0_12, %c0_13] : memref<32x16xf32, #tpu.memory_space<vmem>>, vector<32x16xf32>
    %c0_14 = arith.constant 0 : index
    %c0_15 = arith.constant 0 : index
    %9 = vector.load %arg5[%c0_14, %c0_15] : memref<16x32xf32, #tpu.memory_space<vmem>>, vector<16x32xf32>
    %c0_16 = arith.constant 0 : index
    %c0_17 = arith.constant 0 : index
    %10 = memref.load %arg1[%c0_16, %c0_17] : memref<8x4xf32, #tpu.memory_space<smem>>
    %11 = vector.broadcast %10 : f32 to vector<16x16xf32>
    %12 = arith.mulf %1, %11 : vector<16x16xf32>
    %c0_18 = arith.constant 0 : index
    %c1_19 = arith.constant 1 : index
    %13 = memref.load %arg1[%c0_18, %c1_19] : memref<8x4xf32, #tpu.memory_space<smem>>
    %14 = vector.broadcast %13 : f32 to vector<16x16xf32>
    %15 = arith.mulf %3, %14 : vector<16x16xf32>
    %16 = arith.addf %12, %15 : vector<16x16xf32>
    %c0_20 = arith.constant 0 : index
    %c2_21 = arith.constant 2 : index
    %17 = memref.load %arg1[%c0_20, %c2_21] : memref<8x4xf32, #tpu.memory_space<smem>>
    %18 = vector.broadcast %17 : f32 to vector<16x16xf32>
    %19 = arith.mulf %5, %18 : vector<16x16xf32>
    %20 = arith.addf %16, %19 : vector<16x16xf32>
    %c0_22 = arith.constant 0 : index
    %c3_23 = arith.constant 3 : index
    %21 = memref.load %arg1[%c0_22, %c3_23] : memref<8x4xf32, #tpu.memory_space<smem>>
    %22 = vector.broadcast %21 : f32 to vector<16x16xf32>
    %23 = arith.mulf %7, %22 : vector<16x16xf32>
    %24 = arith.addf %20, %23 : vector<16x16xf32>
    %c0_24 = arith.constant 0 : index
    %c0_25 = arith.constant 0 : index
    %25 = memref.load %arg2[%c0_24, %c0_25] : memref<8x1xf32, #tpu.memory_space<smem>>
    %26 = vector.broadcast %25 : f32 to vector<16x16xf32>
    %27 = arith.addf %24, %26 : vector<16x16xf32>
    %cst = arith.constant 5.000000e-01 : f32
    %28 = vector.broadcast %cst : f32 to vector<16x16xf32>
    %29 = arith.mulf %28, %27 : vector<16x16xf32>
    %cst_26 = arith.constant 0.707106769 : f32
    %30 = vector.broadcast %cst_26 : f32 to vector<16x16xf32>
    %31 = arith.mulf %27, %30 : vector<16x16xf32>
    %32 = math.erf %31 : vector<16x16xf32>
    %cst_27 = arith.constant 1.000000e+00 : f32
    %33 = vector.broadcast %cst_27 : f32 to vector<16x16xf32>
    %34 = arith.addf %33, %32 : vector<16x16xf32>
    %35 = arith.mulf %29, %34 : vector<16x16xf32>
    %cst_28 = arith.constant dense<0.000000e+00> : vector<16x32xf32>
    %36 = tpu.matmul %35, %9, %cst_28 {dimension_numbers = #tpu.dot_dimension_numbers<[1], [0], [0], [1], [0, 0, 1, 1], [], []>} : vector<16x16xf32>, vector<16x32xf32>, vector<16x32xf32> -> vector<16x32xf32>
    %cst_29 = arith.constant dense<0.000000e+00> : vector<32x32xf32>
    %37 = tpu.matmul %8, %36, %cst_29 {dimension_numbers = #tpu.dot_dimension_numbers<[1], [0], [0], [1], [0, 0, 1, 1], [], []>} : vector<32x16xf32>, vector<16x32xf32>, vector<32x32xf32> -> vector<32x32xf32>
    %c0_30 = arith.constant 0 : index
    %c0_31 = arith.constant 0 : index
    %c0_32 = arith.constant 0 : index
    %c0_33 = arith.constant 0 : index
    %38 = vector.load %arg6[%c0_30, %c0_31, %c0_32, %c0_33] : memref<1x8x32x32xf32, #tpu.memory_space<vmem>>, vector<1x1x32x32xf32>
    %39 = vector.shape_cast %38 : vector<1x1x32x32xf32> to vector<32x32xf32>
    %40 = vector.shape_cast %37 : vector<32x32xf32> to vector<1x1x32x32xf32>
    tpu.vector_store %arg6[%c0_30, %c0_31, %c0_32, %c0_33], %40 {strides = array<i32>} : memref<1x8x32x32xf32, #tpu.memory_space<vmem>>, vector<1x1x32x32xf32>,
    %c1_34 = arith.constant 1 : index
    %c0_35 = arith.constant 0 : index
    %41 = memref.load %arg1[%c1_34, %c0_35] : memref<8x4xf32, #tpu.memory_space<smem>>
    %42 = vector.broadcast %41 : f32 to vector<16x16xf32>
    %43 = arith.mulf %1, %42 : vector<16x16xf32>
    %c1_36 = arith.constant 1 : index
    %c1_37 = arith.constant 1 : index
    %44 = memref.load %arg1[%c1_36, %c1_37] : memref<8x4xf32, #tpu.memory_space<smem>>
    %45 = vector.broadcast %44 : f32 to vector<16x16xf32>
    %46 = arith.mulf %3, %45 : vector<16x16xf32>
    %47 = arith.addf %43, %46 : vector<16x16xf32>
    %c1_38 = arith.constant 1 : index
    %c2_39 = arith.constant 2 : index
    %48 = memref.load %arg1[%c1_38, %c2_39] : memref<8x4xf32, #tpu.memory_space<smem>>
    %49 = vector.broadcast %48 : f32 to vector<16x16xf32>
    %50 = arith.mulf %5, %49 : vector<16x16xf32>
    %51 = arith.addf %47, %50 : vector<16x16xf32>
    %c1_40 = arith.constant 1 : index
    %c3_41 = arith.constant 3 : index
    %52 = memref.load %arg1[%c1_40, %c3_41] : memref<8x4xf32, #tpu.memory_space<smem>>
    %53 = vector.broadcast %52 : f32 to vector<16x16xf32>
    %54 = arith.mulf %7, %53 : vector<16x16xf32>
    %55 = arith.addf %51, %54 : vector<16x16xf32>
    %c1_42 = arith.constant 1 : index
    %c0_43 = arith.constant 0 : index
    %56 = memref.load %arg2[%c1_42, %c0_43] : memref<8x1xf32, #tpu.memory_space<smem>>
    %57 = vector.broadcast %56 : f32 to vector<16x16xf32>
    %58 = arith.addf %55, %57 : vector<16x16xf32>
    %cst_44 = arith.constant 5.000000e-01 : f32
    %59 = vector.broadcast %cst_44 : f32 to vector<16x16xf32>
    %60 = arith.mulf %59, %58 : vector<16x16xf32>
    %cst_45 = arith.constant 0.707106769 : f32
    %61 = vector.broadcast %cst_45 : f32 to vector<16x16xf32>
    %62 = arith.mulf %58, %61 : vector<16x16xf32>
    %63 = math.erf %62 : vector<16x16xf32>
    %cst_46 = arith.constant 1.000000e+00 : f32
    %64 = vector.broadcast %cst_46 : f32 to vector<16x16xf32>
    %65 = arith.addf %64, %63 : vector<16x16xf32>
    %66 = arith.mulf %60, %65 : vector<16x16xf32>
    %cst_47 = arith.constant dense<0.000000e+00> : vector<16x32xf32>
    %67 = tpu.matmul %66, %9, %cst_47 {dimension_numbers = #tpu.dot_dimension_numbers<[1], [0], [0], [1], [0, 0, 1, 1], [], []>} : vector<16x16xf32>, vector<16x32xf32>, vector<16x32xf32> -> vector<16x32xf32>
    %cst_48 = arith.constant dense<0.000000e+00> : vector<32x32xf32>
    %68 = tpu.matmul %8, %67, %cst_48 {dimension_numbers = #tpu.dot_dimension_numbers<[1], [0], [0], [1], [0, 0, 1, 1], [], []>} : vector<32x16xf32>, vector<16x32xf32>, vector<32x32xf32> -> vector<32x32xf32>
    %c0_49 = arith.constant 0 : index
    %c1_50 = arith.constant 1 : index
    %c0_51 = arith.constant 0 : index
    %c0_52 = arith.constant 0 : index
    %69 = vector.load %arg6[%c0_49, %c1_50, %c0_51, %c0_52] : memref<1x8x32x32xf32, #tpu.memory_space<vmem>>, vector<1x1x32x32xf32>
    %70 = vector.shape_cast %69 : vector<1x1x32x32xf32> to vector<32x32xf32>
    %71 = vector.shape_cast %68 : vector<32x32xf32> to vector<1x1x32x32xf32>
    tpu.vector_store %arg6[%c0_49, %c1_50, %c0_51, %c0_52], %71 {strides = array<i32>} : memref<1x8x32x32xf32, #tpu.memory_space<vmem>>, vector<1x1x32x32xf32>,
    %c2_53 = arith.constant 2 : index
    %c0_54 = arith.constant 0 : index
    %72 = memref.load %arg1[%c2_53, %c0_54] : memref<8x4xf32, #tpu.memory_space<smem>>
    %73 = vector.broadcast %72 : f32 to vector<16x16xf32>
    %74 = arith.mulf %1, %73 : vector<16x16xf32>
    %c2_55 = arith.constant 2 : index
    %c1_56 = arith.constant 1 : index
    %75 = memref.load %arg1[%c2_55, %c1_56] : memref<8x4xf32, #tpu.memory_space<smem>>
    %76 = vector.broadcast %75 : f32 to vector<16x16xf32>
    %77 = arith.mulf %3, %76 : vector<16x16xf32>
    %78 = arith.addf %74, %77 : vector<16x16xf32>
    %c2_57 = arith.constant 2 : index
    %c2_58 = arith.constant 2 : index
    %79 = memref.load %arg1[%c2_57, %c2_58] : memref<8x4xf32, #tpu.memory_space<smem>>
    %80 = vector.broadcast %79 : f32 to vector<16x16xf32>
    %81 = arith.mulf %5, %80 : vector<16x16xf32>
    %82 = arith.addf %78, %81 : vector<16x16xf32>
    %c2_59 = arith.constant 2 : index
    %c3_60 = arith.constant 3 : index
    %83 = memref.load %arg1[%c2_59, %c3_60] : memref<8x4xf32, #tpu.memory_space<smem>>
    %84 = vector.broadcast %83 : f32 to vector<16x16xf32>
    %85 = arith.mulf %7, %84 : vector<16x16xf32>
    %86 = arith.addf %82, %85 : vector<16x16xf32>
    %c2_61 = arith.constant 2 : index
    %c0_62 = arith.constant 0 : index
    %87 = memref.load %arg2[%c2_61, %c0_62] : memref<8x1xf32, #tpu.memory_space<smem>>
    %88 = vector.broadcast %87 : f32 to vector<16x16xf32>
    %89 = arith.addf %86, %88 : vector<16x16xf32>
    %cst_63 = arith.constant 5.000000e-01 : f32
    %90 = vector.broadcast %cst_63 : f32 to vector<16x16xf32>
    %91 = arith.mulf %90, %89 : vector<16x16xf32>
    %cst_64 = arith.constant 0.707106769 : f32
    %92 = vector.broadcast %cst_64 : f32 to vector<16x16xf32>
    %93 = arith.mulf %89, %92 : vector<16x16xf32>
    %94 = math.erf %93 : vector<16x16xf32>
    %cst_65 = arith.constant 1.000000e+00 : f32
    %95 = vector.broadcast %cst_65 : f32 to vector<16x16xf32>
    %96 = arith.addf %95, %94 : vector<16x16xf32>
    %97 = arith.mulf %91, %96 : vector<16x16xf32>
    %cst_66 = arith.constant dense<0.000000e+00> : vector<16x32xf32>
    %98 = tpu.matmul %97, %9, %cst_66 {dimension_numbers = #tpu.dot_dimension_numbers<[1], [0], [0], [1], [0, 0, 1, 1], [], []>} : vector<16x16xf32>, vector<16x32xf32>, vector<16x32xf32> -> vector<16x32xf32>
    %cst_67 = arith.constant dense<0.000000e+00> : vector<32x32xf32>
    %99 = tpu.matmul %8, %98, %cst_67 {dimension_numbers = #tpu.dot_dimension_numbers<[1], [0], [0], [1], [0, 0, 1, 1], [], []>} : vector<32x16xf32>, vector<16x32xf32>, vector<32x32xf32> -> vector<32x32xf32>
    %c0_68 = arith.constant 0 : index
    %c2_69 = arith.constant 2 : index
    %c0_70 = arith.constant 0 : index
    %c0_71 = arith.constant 0 : index
    %100 = vector.load %arg6[%c0_68, %c2_69, %c0_70, %c0_71] : memref<1x8x32x32xf32, #tpu.memory_space<vmem>>, vector<1x1x32x32xf32>
    %101 = vector.shape_cast %100 : vector<1x1x32x32xf32> to vector<32x32xf32>
    %102 = vector.shape_cast %99 : vector<32x32xf32> to vector<1x1x32x32xf32>
    tpu.vector_store %arg6[%c0_68, %c2_69, %c0_70, %c0_71], %102 {strides = array<i32>} : memref<1x8x32x32xf32, #tpu.memory_space<vmem>>, vector<1x1x32x32xf32>,
    %c3_72 = arith.constant 3 : index
    %c0_73 = arith.constant 0 : index
    %103 = memref.load %arg1[%c3_72, %c0_73] : memref<8x4xf32, #tpu.memory_space<smem>>
    %104 = vector.broadcast %103 : f32 to vector<16x16xf32>
    %105 = arith.mulf %1, %104 : vector<16x16xf32>
    %c3_74 = arith.constant 3 : index
    %c1_75 = arith.constant 1 : index
    %106 = memref.load %arg1[%c3_74, %c1_75] : memref<8x4xf32, #tpu.memory_space<smem>>
    %107 = vector.broadcast %106 : f32 to vector<16x16xf32>
    %108 = arith.mulf %3, %107 : vector<16x16xf32>
    %109 = arith.addf %105, %108 : vector<16x16xf32>
    %c3_76 = arith.constant 3 : index
    %c2_77 = arith.constant 2 : index
    %110 = memref.load %arg1[%c3_76, %c2_77] : memref<8x4xf32, #tpu.memory_space<smem>>
    %111 = vector.broadcast %110 : f32 to vector<16x16xf32>
    %112 = arith.mulf %5, %111 : vector<16x16xf32>
    %113 = arith.addf %109, %112 : vector<16x16xf32>
    %c3_78 = arith.constant 3 : index
    %c3_79 = arith.constant 3 : index
    %114 = memref.load %arg1[%c3_78, %c3_79] : memref<8x4xf32, #tpu.memory_space<smem>>
    %115 = vector.broadcast %114 : f32 to vector<16x16xf32>
    %116 = arith.mulf %7, %115 : vector<16x16xf32>
    %117 = arith.addf %113, %116 : vector<16x16xf32>
    %c3_80 = arith.constant 3 : index
    %c0_81 = arith.constant 0 : index
    %118 = memref.load %arg2[%c3_80, %c0_81] : memref<8x1xf32, #tpu.memory_space<smem>>
    %119 = vector.broadcast %118 : f32 to vector<16x16xf32>
    %120 = arith.addf %117, %119 : vector<16x16xf32>
    %cst_82 = arith.constant 5.000000e-01 : f32
    %121 = vector.broadcast %cst_82 : f32 to vector<16x16xf32>
    %122 = arith.mulf %121, %120 : vector<16x16xf32>
    %cst_83 = arith.constant 0.707106769 : f32
    %123 = vector.broadcast %cst_83 : f32 to vector<16x16xf32>
    %124 = arith.mulf %120, %123 : vector<16x16xf32>
    %125 = math.erf %124 : vector<16x16xf32>
    %cst_84 = arith.constant 1.000000e+00 : f32
    %126 = vector.broadcast %cst_84 : f32 to vector<16x16xf32>
    %127 = arith.addf %126, %125 : vector<16x16xf32>
    %128 = arith.mulf %122, %127 : vector<16x16xf32>
    %cst_85 = arith.constant dense<0.000000e+00> : vector<16x32xf32>
    %129 = tpu.matmul %128, %9, %cst_85 {dimension_numbers = #tpu.dot_dimension_numbers<[1], [0], [0], [1], [0, 0, 1, 1], [], []>} : vector<16x16xf32>, vector<16x32xf32>, vector<16x32xf32> -> vector<16x32xf32>
    %cst_86 = arith.constant dense<0.000000e+00> : vector<32x32xf32>
    %130 = tpu.matmul %8, %129, %cst_86 {dimension_numbers = #tpu.dot_dimension_numbers<[1], [0], [0], [1], [0, 0, 1, 1], [], []>} : vector<32x16xf32>, vector<16x32xf32>, vector<32x32xf32> -> vector<32x32xf32>
    %c0_87 = arith.constant 0 : index
    %c3_88 = arith.constant 3 : index
    %c0_89 = arith.constant 0 : index
    %c0_90 = arith.constant 0 : index
    %131 = vector.load %arg6[%c0_87, %c3_88, %c0_89, %c0_90] : memref<1x8x32x32xf32, #tpu.memory_space<vmem>>, vector<1x1x32x32xf32>
    %132 = vector.shape_cast %131 : vector<1x1x32x32xf32> to vector<32x32xf32>
    %133 = vector.shape_cast %130 : vector<32x32xf32> to vector<1x1x32x32xf32>
    tpu.vector_store %arg6[%c0_87, %c3_88, %c0_89, %c0_90], %133 {strides = array<i32>} : memref<1x8x32x32xf32, #tpu.memory_space<vmem>>, vector<1x1x32x32xf32>,
    %c4 = arith.constant 4 : index
    %c0_91 = arith.constant 0 : index
    %134 = memref.load %arg1[%c4, %c0_91] : memref<8x4xf32, #tpu.memory_space<smem>>
    %135 = vector.broadcast %134 : f32 to vector<16x16xf32>
    %136 = arith.mulf %1, %135 : vector<16x16xf32>
    %c4_92 = arith.constant 4 : index
    %c1_93 = arith.constant 1 : index
    %137 = memref.load %arg1[%c4_92, %c1_93] : memref<8x4xf32, #tpu.memory_space<smem>>
    %138 = vector.broadcast %137 : f32 to vector<16x16xf32>
    %139 = arith.mulf %3, %138 : vector<16x16xf32>
    %140 = arith.addf %136, %139 : vector<16x16xf32>
    %c4_94 = arith.constant 4 : index
    %c2_95 = arith.constant 2 : index
    %141 = memref.load %arg1[%c4_94, %c2_95] : memref<8x4xf32, #tpu.memory_space<smem>>
    %142 = vector.broadcast %141 : f32 to vector<16x16xf32>
    %143 = arith.mulf %5, %142 : vector<16x16xf32>
    %144 = arith.addf %140, %143 : vector<16x16xf32>
    %c4_96 = arith.constant 4 : index
    %c3_97 = arith.constant 3 : index
    %145 = memref.load %arg1[%c4_96, %c3_97] : memref<8x4xf32, #tpu.memory_space<smem>>
    %146 = vector.broadcast %145 : f32 to vector<16x16xf32>
    %147 = arith.mulf %7, %146 : vector<16x16xf32>
    %148 = arith.addf %144, %147 : vector<16x16xf32>
    %c4_98 = arith.constant 4 : index
    %c0_99 = arith.constant 0 : index
    %149 = memref.load %arg2[%c4_98, %c0_99] : memref<8x1xf32, #tpu.memory_space<smem>>
    %150 = vector.broadcast %149 : f32 to vector<16x16xf32>
    %151 = arith.addf %148, %150 : vector<16x16xf32>
    %cst_100 = arith.constant 5.000000e-01 : f32
    %152 = vector.broadcast %cst_100 : f32 to vector<16x16xf32>
    %153 = arith.mulf %152, %151 : vector<16x16xf32>
    %cst_101 = arith.constant 0.707106769 : f32
    %154 = vector.broadcast %cst_101 : f32 to vector<16x16xf32>
    %155 = arith.mulf %151, %154 : vector<16x16xf32>
    %156 = math.erf %155 : vector<16x16xf32>
    %cst_102 = arith.constant 1.000000e+00 : f32
    %157 = vector.broadcast %cst_102 : f32 to vector<16x16xf32>
    %158 = arith.addf %157, %156 : vector<16x16xf32>
    %159 = arith.mulf %153, %158 : vector<16x16xf32>
    %cst_103 = arith.constant dense<0.000000e+00> : vector<16x32xf32>
    %160 = tpu.matmul %159, %9, %cst_103 {dimension_numbers = #tpu.dot_dimension_numbers<[1], [0], [0], [1], [0, 0, 1, 1], [], []>} : vector<16x16xf32>, vector<16x32xf32>, vector<16x32xf32> -> vector<16x32xf32>
    %cst_104 = arith.constant dense<0.000000e+00> : vector<32x32xf32>
    %161 = tpu.matmul %8, %160, %cst_104 {dimension_numbers = #tpu.dot_dimension_numbers<[1], [0], [0], [1], [0, 0, 1, 1], [], []>} : vector<32x16xf32>, vector<16x32xf32>, vector<32x32xf32> -> vector<32x32xf32>
    %c0_105 = arith.constant 0 : index
    %c4_106 = arith.constant 4 : index
    %c0_107 = arith.constant 0 : index
    %c0_108 = arith.constant 0 : index
    %162 = vector.load %arg6[%c0_105, %c4_106, %c0_107, %c0_108] : memref<1x8x32x32xf32, #tpu.memory_space<vmem>>, vector<1x1x32x32xf32>
    %163 = vector.shape_cast %162 : vector<1x1x32x32xf32> to vector<32x32xf32>
    %164 = vector.shape_cast %161 : vector<32x32xf32> to vector<1x1x32x32xf32>
    tpu.vector_store %arg6[%c0_105, %c4_106, %c0_107, %c0_108], %164 {strides = array<i32>} : memref<1x8x32x32xf32, #tpu.memory_space<vmem>>, vector<1x1x32x32xf32>,
    %c5 = arith.constant 5 : index
    %c0_109 = arith.constant 0 : index
    %165 = memref.load %arg1[%c5, %c0_109] : memref<8x4xf32, #tpu.memory_space<smem>>
    %166 = vector.broadcast %165 : f32 to vector<16x16xf32>
    %167 = arith.mulf %1, %166 : vector<16x16xf32>
    %c5_110 = arith.constant 5 : index
    %c1_111 = arith.constant 1 : index
    %168 = memref.load %arg1[%c5_110, %c1_111] : memref<8x4xf32, #tpu.memory_space<smem>>
    %169 = vector.broadcast %168 : f32 to vector<16x16xf32>
    %170 = arith.mulf %3, %169 : vector<16x16xf32>
    %171 = arith.addf %167, %170 : vector<16x16xf32>
    %c5_112 = arith.constant 5 : index
    %c2_113 = arith.constant 2 : index
    %172 = memref.load %arg1[%c5_112, %c2_113] : memref<8x4xf32, #tpu.memory_space<smem>>
    %173 = vector.broadcast %172 : f32 to vector<16x16xf32>
    %174 = arith.mulf %5, %173 : vector<16x16xf32>
    %175 = arith.addf %171, %174 : vector<16x16xf32>
    %c5_114 = arith.constant 5 : index
    %c3_115 = arith.constant 3 : index
    %176 = memref.load %arg1[%c5_114, %c3_115] : memref<8x4xf32, #tpu.memory_space<smem>>
    %177 = vector.broadcast %176 : f32 to vector<16x16xf32>
    %178 = arith.mulf %7, %177 : vector<16x16xf32>
    %179 = arith.addf %175, %178 : vector<16x16xf32>
    %c5_116 = arith.constant 5 : index
    %c0_117 = arith.constant 0 : index
    %180 = memref.load %arg2[%c5_116, %c0_117] : memref<8x1xf32, #tpu.memory_space<smem>>
    %181 = vector.broadcast %180 : f32 to vector<16x16xf32>
    %182 = arith.addf %179, %181 : vector<16x16xf32>
    %cst_118 = arith.constant 5.000000e-01 : f32
    %183 = vector.broadcast %cst_118 : f32 to vector<16x16xf32>
    %184 = arith.mulf %183, %182 : vector<16x16xf32>
    %cst_119 = arith.constant 0.707106769 : f32
    %185 = vector.broadcast %cst_119 : f32 to vector<16x16xf32>
    %186 = arith.mulf %182, %185 : vector<16x16xf32>
    %187 = math.erf %186 : vector<16x16xf32>
    %cst_120 = arith.constant 1.000000e+00 : f32
    %188 = vector.broadcast %cst_120 : f32 to vector<16x16xf32>
    %189 = arith.addf %188, %187 : vector<16x16xf32>
    %190 = arith.mulf %184, %189 : vector<16x16xf32>
    %cst_121 = arith.constant dense<0.000000e+00> : vector<16x32xf32>
    %191 = tpu.matmul %190, %9, %cst_121 {dimension_numbers = #tpu.dot_dimension_numbers<[1], [0], [0], [1], [0, 0, 1, 1], [], []>} : vector<16x16xf32>, vector<16x32xf32>, vector<16x32xf32> -> vector<16x32xf32>
    %cst_122 = arith.constant dense<0.000000e+00> : vector<32x32xf32>
    %192 = tpu.matmul %8, %191, %cst_122 {dimension_numbers = #tpu.dot_dimension_numbers<[1], [0], [0], [1], [0, 0, 1, 1], [], []>} : vector<32x16xf32>, vector<16x32xf32>, vector<32x32xf32> -> vector<32x32xf32>
    %c0_123 = arith.constant 0 : index
    %c5_124 = arith.constant 5 : index
    %c0_125 = arith.constant 0 : index
    %c0_126 = arith.constant 0 : index
    %193 = vector.load %arg6[%c0_123, %c5_124, %c0_125, %c0_126] : memref<1x8x32x32xf32, #tpu.memory_space<vmem>>, vector<1x1x32x32xf32>
    %194 = vector.shape_cast %193 : vector<1x1x32x32xf32> to vector<32x32xf32>
    %195 = vector.shape_cast %192 : vector<32x32xf32> to vector<1x1x32x32xf32>
    tpu.vector_store %arg6[%c0_123, %c5_124, %c0_125, %c0_126], %195 {strides = array<i32>} : memref<1x8x32x32xf32, #tpu.memory_space<vmem>>, vector<1x1x32x32xf32>,
    %c6 = arith.constant 6 : index
    %c0_127 = arith.constant 0 : index
    %196 = memref.load %arg1[%c6, %c0_127] : memref<8x4xf32, #tpu.memory_space<smem>>
    %197 = vector.broadcast %196 : f32 to vector<16x16xf32>
    %198 = arith.mulf %1, %197 : vector<16x16xf32>
    %c6_128 = arith.constant 6 : index
    %c1_129 = arith.constant 1 : index
    %199 = memref.load %arg1[%c6_128, %c1_129] : memref<8x4xf32, #tpu.memory_space<smem>>
    %200 = vector.broadcast %199 : f32 to vector<16x16xf32>
    %201 = arith.mulf %3, %200 : vector<16x16xf32>
    %202 = arith.addf %198, %201 : vector<16x16xf32>
    %c6_130 = arith.constant 6 : index
    %c2_131 = arith.constant 2 : index
    %203 = memref.load %arg1[%c6_130, %c2_131] : memref<8x4xf32, #tpu.memory_space<smem>>
    %204 = vector.broadcast %203 : f32 to vector<16x16xf32>
    %205 = arith.mulf %5, %204 : vector<16x16xf32>
    %206 = arith.addf %202, %205 : vector<16x16xf32>
    %c6_132 = arith.constant 6 : index
    %c3_133 = arith.constant 3 : index
    %207 = memref.load %arg1[%c6_132, %c3_133] : memref<8x4xf32, #tpu.memory_space<smem>>
    %208 = vector.broadcast %207 : f32 to vector<16x16xf32>
    %209 = arith.mulf %7, %208 : vector<16x16xf32>
    %210 = arith.addf %206, %209 : vector<16x16xf32>
    %c6_134 = arith.constant 6 : index
    %c0_135 = arith.constant 0 : index
    %211 = memref.load %arg2[%c6_134, %c0_135] : memref<8x1xf32, #tpu.memory_space<smem>>
    %212 = vector.broadcast %211 : f32 to vector<16x16xf32>
    %213 = arith.addf %210, %212 : vector<16x16xf32>
    %cst_136 = arith.constant 5.000000e-01 : f32
    %214 = vector.broadcast %cst_136 : f32 to vector<16x16xf32>
    %215 = arith.mulf %214, %213 : vector<16x16xf32>
    %cst_137 = arith.constant 0.707106769 : f32
    %216 = vector.broadcast %cst_137 : f32 to vector<16x16xf32>
    %217 = arith.mulf %213, %216 : vector<16x16xf32>
    %218 = math.erf %217 : vector<16x16xf32>
    %cst_138 = arith.constant 1.000000e+00 : f32
    %219 = vector.broadcast %cst_138 : f32 to vector<16x16xf32>
    %220 = arith.addf %219, %218 : vector<16x16xf32>
    %221 = arith.mulf %215, %220 : vector<16x16xf32>
    %cst_139 = arith.constant dense<0.000000e+00> : vector<16x32xf32>
    %222 = tpu.matmul %221, %9, %cst_139 {dimension_numbers = #tpu.dot_dimension_numbers<[1], [0], [0], [1], [0, 0, 1, 1], [], []>} : vector<16x16xf32>, vector<16x32xf32>, vector<16x32xf32> -> vector<16x32xf32>
    %cst_140 = arith.constant dense<0.000000e+00> : vector<32x32xf32>
    %223 = tpu.matmul %8, %222, %cst_140 {dimension_numbers = #tpu.dot_dimension_numbers<[1], [0], [0], [1], [0, 0, 1, 1], [], []>} : vector<32x16xf32>, vector<16x32xf32>, vector<32x32xf32> -> vector<32x32xf32>
    %c0_141 = arith.constant 0 : index
    %c6_142 = arith.constant 6 : index
    %c0_143 = arith.constant 0 : index
    %c0_144 = arith.constant 0 : index
    %224 = vector.load %arg6[%c0_141, %c6_142, %c0_143, %c0_144] : memref<1x8x32x32xf32, #tpu.memory_space<vmem>>, vector<1x1x32x32xf32>
    %225 = vector.shape_cast %224 : vector<1x1x32x32xf32> to vector<32x32xf32>
    %226 = vector.shape_cast %223 : vector<32x32xf32> to vector<1x1x32x32xf32>
    tpu.vector_store %arg6[%c0_141, %c6_142, %c0_143, %c0_144], %226 {strides = array<i32>} : memref<1x8x32x32xf32, #tpu.memory_space<vmem>>, vector<1x1x32x32xf32>,
    %c7 = arith.constant 7 : index
    %c0_145 = arith.constant 0 : index
    %227 = memref.load %arg1[%c7, %c0_145] : memref<8x4xf32, #tpu.memory_space<smem>>
    %228 = vector.broadcast %227 : f32 to vector<16x16xf32>
    %229 = arith.mulf %1, %228 : vector<16x16xf32>
    %c7_146 = arith.constant 7 : index
    %c1_147 = arith.constant 1 : index
    %230 = memref.load %arg1[%c7_146, %c1_147] : memref<8x4xf32, #tpu.memory_space<smem>>
    %231 = vector.broadcast %230 : f32 to vector<16x16xf32>
    %232 = arith.mulf %3, %231 : vector<16x16xf32>
    %233 = arith.addf %229, %232 : vector<16x16xf32>
    %c7_148 = arith.constant 7 : index
    %c2_149 = arith.constant 2 : index
    %234 = memref.load %arg1[%c7_148, %c2_149] : memref<8x4xf32, #tpu.memory_space<smem>>
    %235 = vector.broadcast %234 : f32 to vector<16x16xf32>
    %236 = arith.mulf %5, %235 : vector<16x16xf32>
    %237 = arith.addf %233, %236 : vector<16x16xf32>
    %c7_150 = arith.constant 7 : index
    %c3_151 = arith.constant 3 : index
    %238 = memref.load %arg1[%c7_150, %c3_151] : memref<8x4xf32, #tpu.memory_space<smem>>
    %239 = vector.broadcast %238 : f32 to vector<16x16xf32>
    %240 = arith.mulf %7, %239 : vector<16x16xf32>
    %241 = arith.addf %237, %240 : vector<16x16xf32>
    %c7_152 = arith.constant 7 : index
    %c0_153 = arith.constant 0 : index
    %242 = memref.load %arg2[%c7_152, %c0_153] : memref<8x1xf32, #tpu.memory_space<smem>>
    %243 = vector.broadcast %242 : f32 to vector<16x16xf32>
    %244 = arith.addf %241, %243 : vector<16x16xf32>
    %cst_154 = arith.constant 5.000000e-01 : f32
    %245 = vector.broadcast %cst_154 : f32 to vector<16x16xf32>
    %246 = arith.mulf %245, %244 : vector<16x16xf32>
    %cst_155 = arith.constant 0.707106769 : f32
    %247 = vector.broadcast %cst_155 : f32 to vector<16x16xf32>
    %248 = arith.mulf %244, %247 : vector<16x16xf32>
    %249 = math.erf %248 : vector<16x16xf32>
    %cst_156 = arith.constant 1.000000e+00 : f32
    %250 = vector.broadcast %cst_156 : f32 to vector<16x16xf32>
    %251 = arith.addf %250, %249 : vector<16x16xf32>
    %252 = arith.mulf %246, %251 : vector<16x16xf32>
    %cst_157 = arith.constant dense<0.000000e+00> : vector<16x32xf32>
    %253 = tpu.matmul %252, %9, %cst_157 {dimension_numbers = #tpu.dot_dimension_numbers<[1], [0], [0], [1], [0, 0, 1, 1], [], []>} : vector<16x16xf32>, vector<16x32xf32>, vector<16x32xf32> -> vector<16x32xf32>
    %cst_158 = arith.constant dense<0.000000e+00> : vector<32x32xf32>
    %254 = tpu.matmul %8, %253, %cst_158 {dimension_numbers = #tpu.dot_dimension_numbers<[1], [0], [0], [1], [0, 0, 1, 1], [], []>} : vector<32x16xf32>, vector<16x32xf32>, vector<32x32xf32> -> vector<32x32xf32>
    %c0_159 = arith.constant 0 : index
    %c7_160 = arith.constant 7 : index
    %c0_161 = arith.constant 0 : index
    %c0_162 = arith.constant 0 : index
    %255 = vector.load %arg6[%c0_159, %c7_160, %c0_161, %c0_162] : memref<1x8x32x32xf32, #tpu.memory_space<vmem>>, vector<1x1x32x32xf32>
    %256 = vector.shape_cast %255 : vector<1x1x32x32xf32> to vector<32x32xf32>
    %257 = vector.shape_cast %254 : vector<32x32xf32> to vector<1x1x32x32xf32>
    tpu.vector_store %arg6[%c0_159, %c7_160, %c0_161, %c0_162], %257 {strides = array<i32>} : memref<1x8x32x32xf32, #tpu.memory_space<vmem>>, vector<1x1x32x32xf32>,
    return
  }
  func.func @transform_0(%arg0: i32) -> (i32, i32) {
    %c0_i32 = arith.constant 0 : i32
    %c0_i32_0 = arith.constant 0 : i32
    %c0_i32_1 = arith.constant 0 : i32
    return %c0_i32, %c0_i32_0 : i32, i32
  }
  func.func @transform_1(%arg0: i32) -> (i32, i32) {
    %c0_i32 = arith.constant 0 : i32
    %c0_i32_0 = arith.constant 0 : i32
    %c0_i32_1 = arith.constant 0 : i32
    return %c0_i32, %c0_i32_0 : i32, i32
  }
  func.func @transform_2(%arg0: i32) -> (i32, i32, i32, i32) {
    %c0_i32 = arith.constant 0 : i32
    %c0_i32_0 = arith.constant 0 : i32
    %c0_i32_1 = arith.constant 0 : i32
    %c0_i32_2 = arith.constant 0 : i32
    return %arg0, %c0_i32, %c0_i32_0, %c0_i32_1 : i32, i32, i32, i32
  }
  func.func @transform_3(%arg0: i32) -> (i32, i32) {
    %c0_i32 = arith.constant 0 : i32
    %c0_i32_0 = arith.constant 0 : i32
    %c0_i32_1 = arith.constant 0 : i32
    return %c0_i32, %c0_i32_0 : i32, i32
  }
  func.func @transform_4(%arg0: i32) -> (i32, i32) {
    %c0_i32 = arith.constant 0 : i32
    %c0_i32_0 = arith.constant 0 : i32
    %c0_i32_1 = arith.constant 0 : i32
    return %c0_i32, %c0_i32_0 : i32, i32
  }
  func.func @transform_5(%arg0: i32) -> (i32, i32, i32, i32) {
    %c0_i32 = arith.constant 0 : i32
    %c0_i32_0 = arith.constant 0 : i32
    %c0_i32_1 = arith.constant 0 : i32
    %c0_i32_2 = arith.constant 0 : i32
    return %arg0, %c0_i32, %c0_i32_0, %c0_i32_1 : i32, i32, i32, i32
  }
}

</mosaic_0001>

<bundles_post_ra>
// kernel: tpu_custom_call.1
= control target key start
LH: loop header
LB: loop body
LE: loop exit
PB: predicated region body
PF: predicated region fallthrough
CT: control target
= control target key end

     0   :  { %10 = vsyncpa [#allocation5], 0  ;;  %s3265_s0 = inlined_call_operand.vmem [shape: f32[8,4], index: 0, kind: input, shape index: {}]   ;;  %s3266_s1 = inlined_call_operand.vmem [shape: f32[8,1], index: 1, kind: input, shape index: {}]   ;;  %s3267_s2 = inlined_call_operand.hbm [shape: f32[2,4,16,16], index: 2, kind: input, shape index: {}]   ;;  %s3268_s3 = inlined_call_operand.vmem [shape: f32[32,16], index: 3, kind: input, shape index: {}]   ;;  %s3269_s4 = inlined_call_operand.vmem [shape: f32[16,32], index: 4, kind: input, shape index: {}]   ;;  %s3270_s5 = inlined_call_operand.hbm [shape: f32[2,8,32,32], index: 5, kind: output, shape index: {}]  }
   0x1   :  { %11 = vsyncpa [#allocation7], 0 }
   0x2   :  { %12 = vsyncpa [#allocation3], 0 }
   0x3   :  { %14 = vsyncpa [#allocation3 + $0x1], 0 }
   0x4   :  { %15 = vsyncpa [#allocation4], 0 }
   0x5   :  { %17 = vsyncpa [#allocation4 + $0x1], 0  ;;  %s2762_s18 = smov 0   ;;  %s2764_s19 = smov 0  }
   0x6   :  { %s2766_s20 = smov 0   ;;  %s2768_s21 = smov 0  }
   0x7 LB: > { %s2783_s22 = sadd.s32 4294967295, %s2722_s21   ;;  %s2065_s23 = sadd.s32 4294967294, %s2722_s21   ;;  %s2722_s21 = sphi %s2768_s21, %s3296_s21   ;;  %s2718_s20 = sphi %s2766_s20, %s3295_s20   ;;  %s2714_s19 = sphi %s2764_s19, %s3294_s19   ;;  %s2710_s18 = sphi %s2762_s18, %s3293_s18  }
   0x8   : > { %s2787_s24 = sadd.s32 1, %s2722_s21   ;;  %s72_s25 = sadd.s32 1, %s2718_s20 }
   0x9   : > { %s69_s26 = ssub.s32 %s2722_s21, %s2787_s24  ;;  %p79_p0 = scmp.ne.s32.totalorder %s2718_s20, %s2714_s19 }
   0xa   : > { %p70_p1 = scmp.eq.s32.totalorder %s69_s26, 0  ;;  %p80_p2 = scmp.eq.s32.totalorder %s2722_s21, 0 }
   0xb   : > { %p85_p3 = scmp.ne.s32.totalorder %s2714_s19, %s2710_s18  ;;  %p3271_p4 = scmp.eq.s32.totalorder %s2783_s22, 0 }
   0xc   : > { %s2799_s27 = scalar_select %p70_p1, %s2718_s20, %s72_s25  }
   0xd   : > { %p2801_p5 = por %p80_p2, %p79_p0  ;;  %p2807_p6 = por %p3271_p4, %p85_p3 }
   0xe   : > { %p151_p7 = scmp.eq.s32.totalorder %s2783_s22, 1  ;;  %p157_p8 = scmp.eq.s32.totalorder %s2065_s23, 1 }
   0xf   : > { %s3277_s29 = scalar_select %p2807_p6, 1, 0 }
  0x10   : > { %p2066_p9 = scmp.ge.s32.totalorder %s2722_s21, 1  ;;  %p164_p10 = scmp.lt.s32.totalorder %s2722_s21, 3 }
  0x11   : > { %p2814_p11 = por %p151_p7, %p79_p0  ;;  %p2818_p12 = por %p157_p8, %p85_p3 }
  0x12   : > { %p2822_p13 = pnand %p2066_p9, %p164_p10  ;;  %s177_s10 = sshll.u32 %s3265_s0, 4  ;;  %s178_s10 = int_to_ptr.vmem [resolvable:$true] %s177_s10 }
  0x13   : > { %s3278_s30 = scalar_select %p2814_p11, 1, 0 }
  0x14   : > { %s3279_s6 = scalar_select %p2818_p12, 1, 0 }
  0x15   : > { %s3280_s7 = scalar_select %p2822_p13, 1, 0 }
  0x16   : > { %p2497_p1 = pneg %p2822_p13  ;;  %p2514_p2 = scmp.lt.s32.totalorder %s2722_s21, 2 }
  0x17   : > { %s188_s14 = sshll.u32 %s3266_s1, 4  ;;  %s2588_s16 = scalar_lea.vmem %s178_s10, 128  ;;  %s189_s14 = int_to_ptr.vmem [resolvable:$true] %s188_s14 }
  0x18   : > { %p2835_p7 = pnand %p2497_p1, %p3271_p4  ;;  %p2844_p3 = pnand %p2514_p2, %p2801_p5 }
  0x19   : > { %p2589_p8 = scmp.ne.s32.totalorder %s178_s10, %s2588_s16  ;;  %p2596_p0 = scmp.lt.s32.totalorder %s178_s10, %s178_s10 }
  0x1a   : > { %s3282_s15 = scalar_select %p2844_p3, 1, 0 }
  0x1b   : > { %p2590_p9 = pneg %p2835_p7  ;;  %p2597_p4 = scmp.lt.s32.totalorder %s2588_s16, %s2588_s16 }
  0x1d   : > { %p2591_p10 = pnand %p2590_p9, %p2589_p8  ;;  %p2598_p12 = por %p2597_p4, %p2596_p0 }
  0x1f   : > { %p2592_p1 = pneg %p2591_p10 }
  0x21   : > { %p2599_p11 = pnand %p2598_p12, %p2592_p1 }
  0x23   : > { %2602 = shalt.err (!%p2599_p11)
}
  0x24   : > { %s2724_s17 = smov [#allocation2]   ;;  %s205_s23 = sand.u32 1, %s2718_s20  }
  0x25   : > { %2500 = dma.vmem_to_smem (!%p2835_p7), %s178_s10, 128, %s2724_s17, [#allocation5]  }
  0x26   : > { %s2603_s25 = scalar_lea.vmem %s189_s14, 128  ;;  %p2611_p8 = scmp.lt.s32.totalorder %s189_s14, %s189_s14 }
  0x27   : > { %p2604_p5 = scmp.ne.s32.totalorder %s189_s14, %s2603_s25  ;;  %p2612_p10 = scmp.lt.s32.totalorder %s2603_s25, %s2603_s25 }
  0x29   : > { %p2606_p2 = pnand %p2604_p5, %p2590_p9  ;;  %p2613_p13 = por %p2612_p10, %p2611_p8 }
  0x2b   : > { %p2607_p6 = pneg %p2606_p2 }
  0x2d   : > { %p2614_p3 = pnand %p2613_p13, %p2607_p6 }
  0x2f   : > { %2617 = shalt.err (!%p2614_p3)
}
  0x30   : > { %s2725_s26 = smov [#allocation6]   ;;  %s2070_s28 = sshll.u32 %s205_s23, 6 }
  0x31   : > { %2503 = dma.vmem_to_smem (!%p2835_p7), %s189_s14, 128, %s2725_s26, [#allocation7]  }
  0x32   : > { %s2203_s8 = sshll.u32 %s2722_s21, 10  ;;  %s209_s13 = scalar_lea.vmem [#allocation8], %s2070_s28 }
  0x33   : > { %s2865_s12 = scalar_lea.hbm %s3267_s2, %s2203_s8  ;;  %s216_s16 = sshll.u32 %s209_s13, 4  ;;  %s2867_s16 = int_to_ptr.vmem [resolvable:$true] %s216_s16 }
  0x34   : > { %s2869_s11 = scalar_lea.sflag [#allocation3], %s205_s23  ;;  %s2618_s17 = scalar_lea.hbm %s2865_s12, 1024 }
  0x35   : > { %p2619_p4 = scmp.ne.s32.totalorder %s2865_s12, %s2618_s17  ;;  %p3283_p6 = scmp.ne.s32.totalorder %s3282_s15, 0 }
  0x36   : > { %s2623_s26 = scalar_lea.hbm %s3267_s2, 2048  ;;  %p2624_p0 = scmp.lt.u32.totalorder %s2865_s12, %s3267_s2 }
  0x37   : > { %p2620_p11 = pneg %p3283_p6  ;;  %p2625_p7 = scmp.lt.u32.totalorder %s2623_s26, %s2618_s17 }
  0x38   : > { %p2627_p9 = scmp.lt.u32.totalorder %s2618_s17, %s2865_s12 }
  0x39   : > { %p2621_p12 = pnand %p2620_p11, %p2619_p4  ;;  %p2626_p3 = por %p2625_p7, %p2624_p0 }
  0x3b   : > { %p2622_p13 = pneg %p2621_p12  ;;  %p2628_p1 = por %p2627_p9, %p2626_p3 }
  0x3d   : > { %p2629_p5 = pnand %p2628_p1, %p2622_p13 }
  0x3f   : > { %2632 = shalt.err (!%p2629_p5)
}
  0x40   : > { %s2633_s23 = scalar_lea.vmem %s2867_s16, 1024  ;;  %s2726_s28 = smov [#allocation8]  }
  0x41   : > { %p2634_p2 = scmp.ne.s32.totalorder %s2867_s16, %s2633_s23  ;;  %s2638_s10 = sshll.u32 %s2726_s28, 4  ;;  %s2639_s10 = int_to_ptr.vmem [resolvable:$false] %s2638_s10 }
  0x42   : > { %s2640_s13 = scalar_lea.vmem %s2639_s10, 2048  ;;  %p2641_p4 = scmp.lt.s32.totalorder %s2867_s16, %s2639_s10 }
  0x43   : > { %p2636_p8 = pnand %p2634_p2, %p2620_p11  ;;  %p2642_p12 = scmp.lt.s32.totalorder %s2640_s13, %s2633_s23 }
  0x45   : > { %p2637_p10 = pneg %p2636_p8  ;;  %p2643_p0 = por %p2642_p12, %p2641_p4 }
  0x47   : > { %p2644_p7 = pnand %p2643_p0, %p2637_p10 }
  0x49   : > { %2647 = shalt.err (!%p2644_p7)
}
  0x4a   : > { %s2727_s17 = smov 128   ;;  %s2728_s14 = smov 8  }
  0x4b   : > { %2507 = dma.hbm_to_vmem [thread:$0]  (!%p3283_p6), %s2865_s12, 1024, %s2867_s16, %s2869_s11, %s2727_s17, %s2727_s17, %s2728_s14  }
  0x4c   : > { %p3284_p11 = scmp.ne.s32.totalorder %s3280_s7, 0 }
  0x4d   : > { %p3285_p13 = scmp.eq.s32.totalorder (!%p3284_p11), %s2783_s22, 0 }
  0x4e   : > { %228 = sbr.rel (%p3284_p11) target bundleno = 1268 (0x4f4), region = 40 }
  0x55   : > { %2693 = dma.done.wait (%p3285_p13), [#allocation5], 128   ;;  %p3286_p3 = pmov %p3285_p13 }
  0x57   : > { %2695 = vsyncadd (%p3286_p3), [#allocation5], 4294967168  ;;  %p3287_p9 = pmov %p3286_p3 }
  0x58   : > { %p3288_p1 = pmov %p3286_p3 }
  0x59   : > { %2697 = dma.done.wait (%p3287_p9), [#allocation7], 128  }
  0x5a   : > { %2699 = vsyncadd (%p3288_p1), [#allocation7], 4294967168  ;;  %s2908_s25 = sand.u32 1, %s2714_s19   ;;  %p3289_p6 = scmp.ne.s32.totalorder %s3277_s29, 0 }
  0x5b   : > { %s2076_s7 = sshll.u32 %s2908_s25, 6  ;;  %s239_s15 = scalar_lea.sflag [#allocation3], %s2908_s25 }
  0x5c   : > { %s242_s12 = scalar_lea.vmem [#allocation8], %s2076_s7 }
  0x5d   : > { %2701 = dma.done.wait (%p3289_p6), %s239_s15, 1024  }
  0x5e   : > { %2703 = vsyncadd (%p3289_p6), %s239_s15, 4294966272 }
  0x5f   : > { %247 = sfence }
  0x60   : > { %v285_v0 = vld [vmem:[%s3269_s4] sm:$0xff]  ;;  %v286_v1 = vld [vmem:[%s3269_s4 + $0x8] sm:$0xff]  ;;  %s287_s9 = sld [smem:[#allocation2]]  ;;  %s2084_s23 = sld [smem:[#allocation2 + $0x1]]  ;;  %v2938_v5 = vld [vmem:[%s242_s12 + $0x10] sm:$0xff]  ;;  %vm323_vm0 = vcmask 130048  }
  0x61   : > { %v2922_v2 = vpack.c.bf16 %v286_v1, %v285_v0  ;;  %s2085_s28 = sld [smem:[#allocation2 + $0x2]]  ;;  %s2086_s29 = sld [smem:[#allocation2 + $0x3]]  ;;  %v2930_v3 = vld [vmem:[%s242_s12] sm:$0xff]  ;;  %v2932_v4 = vld [vmem:[%s242_s12 + $0x8] sm:$0xff]  ;;  %v2940_v6 = vld [vmem:[%s242_s12 + $0x18] sm:$0xff]  ;;  %vm502_vm1 = vcmask 261120  }
  0x62   : > { %s2926_s10 = sld [smem:[#allocation6]]  ;;  %s2936_s17 = sld [smem:[#allocation2 + $0x81]]  ;;  %v2946_v7 = vld [vmem:[%s242_s12 + $0x20] sm:$0xff]  ;;  %v2948_v8 = vld [vmem:[%s242_s12 + $0x28] sm:$0xff]  ;;  %v2950_v10 = vld [vmem:[%s242_s12 + $0x30] sm:$0xff] }
  0x63   : > { %2422 = vmatprep.subr.bf16.mxu1 %v2922_v2  ;;  %2430 = vmatprep.subr.bf16.mxu0 %v2922_v2  ;;  %s2934_s13 = sld [smem:[#allocation2 + $0x80]]  ;;  %s2942_s14 = sld [smem:[#allocation2 + $0x82]]  ;;  %v2952_v11 = vld [vmem:[%s242_s12 + $0x38] sm:$0xff] }
  0x64   : > { %2424 = vmatpush3.bf16.msra.mxu1 %v2922_v2  ;;  %2432 = vmatpush3.bf16.msra.mxu0 %v2922_v2  ;;  %s2944_s7 = sld [smem:[#allocation2 + $0x83]]  ;;  %s2963_s15 = sld [smem:[#allocation6 + $0x80]] }
  0x65   : > { %s2108_s11 = sld [smem:[#allocation2 + $0x100]]  ;;  %s2109_s26 = sld [smem:[#allocation2 + $0x101]] }
  0x66   : > { %v288_v9 = vstv %s287_s9  ;;  %v292_v14 = vstv %s2084_s23  ;;  %s2110_s8 = sld [smem:[#allocation2 + $0x102]]  ;;  %s2123_s9 = sld [smem:[#allocation2 + $0x180]] }
  0x67   : > { %v289_v12 = vmul.f32 %v288_v9, %v2930_v3  ;;  %v290_v13 = vmul.f32 %v288_v9, %v2932_v4  ;;  %v293_v15 = vmul.f32 %v2938_v5, %v292_v14  ;;  %v294_v16 = vmul.f32 %v2940_v6, %v292_v14  ;;  %s2124_s23 = sld [smem:[#allocation2 + $0x181]]  ;;  %s2168_s12 = sld [smem:[#allocation2 + $0x300]] }
  0x68   : > { %v298_v17 = vstv %s2085_s28  ;;  %v304_v20 = vstv %s2086_s29  ;;  %v310_v21 = vstv %s2926_s10  ;;  %v512_v27 = vstv %s2936_s17  ;;  %s2111_s28 = sld [smem:[#allocation2 + $0x103]]  ;;  %s2125_s29 = sld [smem:[#allocation2 + $0x182]] }
  0x69   : > { %v299_v18 = vmul.f32 %v2946_v7, %v298_v17  ;;  %v300_v19 = vmul.f32 %v2948_v8, %v298_v17  ;;  %v295_v22 = vadd.f32 %v293_v15, %v289_v12  ;;  %v296_v23 = vadd.f32 %v294_v16, %v290_v13  ;;  %s2993_s10 = sld [smem:[#allocation2 + $0x183]]  ;;  %s2127_s17 = sld [smem:[#allocation6 + $0x180]] }
  0x6a   : > { %v305_v24 = vmul.f32 %v2950_v10, %v304_v20  ;;  %v306_v25 = vmul.f32 %v2952_v11, %v304_v20  ;;  %v508_v26 = vstv %s2934_s13  ;;  %v518_v28 = vstv %s2942_s14  ;;  %s2112_s13 = sld [smem:[#allocation6 + $0x100]]  ;;  %s2169_s16 = sld [smem:[#allocation2 + $0x301]] }
  0x6b   : > { %v524_v29 = vstv %s2944_s7  ;;  %v301_v30 = vadd.f32 %v299_v18, %v295_v22  ;;  %v302_v31 = vadd.f32 %v300_v19, %v296_v23  ;;  %v509_v32 = vmul.f32 %v508_v26, %v2930_v3  ;;  %v2985_v18 = vld [vmem:[%s3268_s3] sm:$0xff]  ;;  %s2157_s14 = sld [smem:[#allocation6 + $0x280]]  ;;  %s2077_s7 = sshll.u32 %s2908_s25, 8 }
  0x6c   : > { %v510_v33 = vmul.f32 %v508_v26, %v2932_v4  ;;  %v513_v34 = vmul.f32 %v2938_v5, %v512_v27  ;;  %v514_v35 = vmul.f32 %v2940_v6, %v512_v27  ;;  %v519_v36 = vmul.f32 %v2946_v7, %v518_v28  ;;  %p3290_p2 = scmp.ne.s32.totalorder %s3278_s30, 0 }
  0x6d   : > { %v520_v37 = vmul.f32 %v2948_v8, %v518_v28  ;;  %v307_v38 = vadd.f32 %v305_v24, %v301_v30  ;;  %v308_v39 = vadd.f32 %v306_v25, %v302_v31  ;;  %v525_v42 = vmul.f32 %v2950_v10, %v524_v29 }
  0x6e   : > { %v515_v40 = vadd.f32 %v513_v34, %v509_v32  ;;  %v516_v41 = vadd.f32 %v514_v35, %v510_v33  ;;  %v526_v43 = vmul.f32 %v2952_v11, %v524_v29  ;;  %v530_v50 = vstv %s2963_s15  ;;  %s3069_s15 = scalar_lea.vmem [#allocation9], %s2077_s7 }
  0x6f   : > { %v311_v44 = vadd.f32 %v310_v21, %v307_v38  ;;  %v312_v45 = vadd.f32 %v310_v21, %v308_v39  ;;  %v715_v19 = vstv %s2108_s11  ;;  %v719_v20 = vstv %s2109_s26  ;;  %s2138_s26 = sld [smem:[#allocation2 + $0x200]]  ;;  %s2170_s11 = sld [smem:[#allocation2 + $0x302]] }
  0x70   : > { %v521_v46 = vadd.f32 %v519_v36, %v515_v40  ;;  %v522_v47 = vadd.f32 %v520_v37, %v516_v41  ;;  %v716_v21 = vmul.f32 %v715_v19, %v2930_v3  ;;  %v720_v22 = vmul.f32 %v2938_v5, %v719_v20 }
  0x71   : > { %v315_v48 = vmul.f32 0.70710677, %v311_v44  ;;  %v316_v49 = vmul.f32 0.70710677, %v312_v45  ;;  %v313_v57 = vmul.f32 0.5, %v311_v44  ;;  %v314_v59 = vmul.f32 0.5, %v312_v45 }
  0x72   : > { %v527_v51 = vadd.f32 %v525_v42, %v521_v46  ;;  %v528_v52 = vadd.f32 %v526_v43, %v522_v47  ;;  %v725_v23 = vstv %s2110_s8  ;;  %v922_v24 = vstv %s2123_s9  ;;  %s2139_s8 = sld [smem:[#allocation2 + $0x201]]  ;;  %s2140_s9 = sld [smem:[#allocation2 + $0x202]] }
  0x73   : > { %2556 = verf.f32 %v315_v48  ;;  %v926_v25 = vstv %s2124_s23  ;;  %v717_v26 = vmul.f32 %v715_v19, %v2932_v4  ;;  %v721_v27 = vmul.f32 %v2940_v6, %v719_v20  ;;  %s2153_s23 = sld [smem:[#allocation2 + $0x280]] }
  0x74   : > { %2558 = verf.f32 %v316_v49  ;;  %v531_v53 = vadd.f32 %v530_v50, %v527_v51  ;;  %v532_v54 = vadd.f32 %v530_v50, %v528_v52  ;;  %v722_v28 = vadd.f32 %v720_v22, %v716_v21 }
  0x75   : > { %v726_v29 = vmul.f32 %v2946_v7, %v725_v23  ;;  %v731_v30 = vstv %s2111_s28  ;;  %v923_v31 = vmul.f32 %v922_v24, %v2930_v3  ;;  %v927_v32 = vmul.f32 %v2938_v5, %v926_v25  ;;  %s2154_s28 = sld [smem:[#allocation2 + $0x281]] }
  0x76   : > { %v535_v55 = vmul.f32 0.70710677, %v531_v53  ;;  %v536_v56 = vmul.f32 0.70710677, %v532_v54  ;;  %v533_v0 = vmul.f32 0.5, %v531_v53  ;;  %v534_v12 = vmul.f32 0.5, %v532_v54 }
  0x77   : > { %v932_v33 = vstv %s2125_s29  ;;  %v723_v34 = vadd.f32 %v721_v27, %v717_v26  ;;  %v727_v35 = vmul.f32 %v2948_v8, %v725_v23  ;;  %v728_v36 = vadd.f32 %v726_v29, %v722_v28  ;;  %v3019_v23 = vld [vmem:[%s3268_s3 + $0x10] sm:$0xff]  ;;  %v3027_v26 = vld [vmem:[%s3268_s3 + $0x18] sm:$0xff]  ;;  %s2141_s29 = sld [smem:[#allocation2 + $0x203]] }
  0x78   : > { %2560 = verf.f32 %v535_v55  ;;  %v732_v37 = vmul.f32 %v2950_v10, %v731_v30  ;;  %v924_v38 = vmul.f32 %v922_v24, %v2932_v4  ;;  %v928_v39 = vmul.f32 %v2940_v6, %v926_v25 }
  0x79   : > { %2562 = verf.f32 %v536_v56  ;;  %v929_v40 = vadd.f32 %v927_v32, %v923_v31  ;;  %v933_v41 = vmul.f32 %v2946_v7, %v932_v33  ;;  %v938_v42 = vstv %s2993_s10  ;;  %s2155_s10 = sld [smem:[#allocation2 + $0x282]] }
  0x7a   : > { %v729_v43 = vadd.f32 %v727_v35, %v723_v34  ;;  %v733_v44 = vmul.f32 %v2952_v11, %v731_v30  ;;  %v734_v45 = vadd.f32 %v732_v37, %v728_v36  ;;  %v930_v46 = vadd.f32 %v928_v39, %v924_v38 }
  0x7b   : > { %v934_v47 = vmul.f32 %v2948_v8, %v932_v33  ;;  %v737_v48 = vstv %s2112_s13  ;;  %v935_v49 = vadd.f32 %v933_v41, %v929_v40  ;;  %v939_v50 = vmul.f32 %v2950_v10, %v938_v42  ;;  %s3051_s13 = sld [smem:[#allocation2 + $0x283]] }
  0x7c   : > { %v735_v51 = vadd.f32 %v733_v44, %v729_v43  ;;  %v738_v52 = vadd.f32 %v737_v48, %v734_v45  ;;  %v940_v54 = vmul.f32 %v2952_v11, %v938_v42  ;;  %v944_v56 = vstv %s2127_s17  ;;  %s2142_s17 = sld [smem:[#allocation6 + $0x200]] }
  0x7d   : > { %v2557_v58 = vpop.eup %2556  ;;  %v936_v53 = vadd.f32 %v934_v47, %v930_v46  ;;  %v941_v55 = vadd.f32 %v939_v50, %v935_v49  ;;  %v1129_v36 = vstv %s2138_s26  ;;  %v1133_v37 = vstv %s2139_s8  ;;  %s2183_s26 = sld [smem:[#allocation2 + $0x380]]  ;;  %s2184_s8 = sld [smem:[#allocation2 + $0x381]] }
  0x7e   : > { %v2559_v60 = vpop.eup %2558  ;;  %v319_v61 = vadd.f32 1.0, %v2557_v58  ;;  %v742_v58 = vmul.f32 0.70710677, %v738_v52  ;;  %v1130_v38 = vmul.f32 %v1129_v36, %v2930_v3  ;;  %v1134_v39 = vmul.f32 %v2938_v5, %v1133_v37 }
  0x7f   : > { %v320_v62 = vadd.f32 1.0, %v2559_v60  ;;  %v945_v60 = vadd.f32 %v944_v56, %v941_v55  ;;  %v1139_v40 = vstv %s2140_s9  ;;  %v1336_v41 = vstv %s2153_s23  ;;  %s2171_s9 = sld [smem:[#allocation2 + $0x303]]  ;;  %s2185_s23 = sld [smem:[#allocation2 + $0x382]] }
  0x80   : > { %v321_v63 = vmul.f32 %v319_v61, %v313_v57  ;;  %v739_v57 = vadd.f32 %v737_v48, %v735_v51  ;;  %2564 = verf.f32 %v742_v58  ;;  %v1340_v42 = vstv %s2154_s28  ;;  %s3113_s28 = sld [smem:[#allocation2 + $0x383]] }
  0x81   : > { %v322_v1 = vmul.f32 %v320_v62, %v314_v59  ;;  %v942_v59 = vadd.f32 %v940_v54, %v936_v53  ;;  %v947_v29 = vmul.f32 0.5, %v945_v60  ;;  %v1131_v43 = vmul.f32 %v1129_v36, %v2932_v4 }
  0x82   : > { %v2561_v9 = vpop.eup %2560  ;;  %2289 = vmatprep.mubr.msk.f32.mxu1 %vm323_vm0, %v321_v63  ;;  %v743_v61 = vmul.f32 0.70710677, %v739_v57  ;;  %v949_v63 = vmul.f32 0.70710677, %v945_v60  ;;  %v741_v24 = vmul.f32 0.5, %v739_v57  ;;  %v1135_v44 = vmul.f32 %v2940_v6, %v1133_v37 }
  0x83   : > { %v2563_v13 = vpop.eup %2562  ;;  %v539_v14 = vadd.f32 1.0, %v2561_v9  ;;  %2290 = vmatmul.mubr.msk.f32.vlgmr.msra.gmra.mrb[0].mxu1 %vm323_vm0, %v322_v1  ;;  %v946_v62 = vadd.f32 %v944_v56, %v942_v59  ;;  %v1136_v45 = vadd.f32 %v1134_v39, %v1130_v38  ;;  %v1140_v46 = vmul.f32 %v2946_v7, %v1139_v40 }
  0x84   : > { %v540_v15 = vadd.f32 1.0, %v2563_v13  ;;  %2296 = vmatprep.mubr.msk.f32.mxu1 %vm323_vm0, %v2985_v18  ;;  %2566 = verf.f32 %v743_v61  ;;  %v1145_v47 = vstv %s2141_s29  ;;  %v1337_v48 = vmul.f32 %v1336_v41, %v2930_v3  ;;  %s2172_s29 = sld [smem:[#allocation6 + $0x300]] }
  0x85   : > { %v541_v16 = vmul.f32 %v539_v14, %v533_v0  ;;  %v950_v0 = vmul.f32 0.70710677, %v946_v62  ;;  %2568 = verf.f32 %v949_v63  ;;  %v948_v32 = vmul.f32 0.5, %v946_v62 }
  0x86   : > { %v542_v17 = vmul.f32 %v540_v15, %v534_v12  ;;  %v1341_v49 = vmul.f32 %v2938_v5, %v1340_v42  ;;  %v1346_v50 = vstv %s2155_s10  ;;  %v1137_v51 = vadd.f32 %v1135_v44, %v1131_v43  ;;  %s2187_s10 = sld [smem:[#allocation6 + $0x380]] }
  0x87   : > { %2306 = vmatprep.mubr.msk.f32.mxu0 %vm323_vm0, %v541_v16  ;;  %2570 = verf.f32 %v950_v0  ;;  %v3013_v16 = vld [vmem:[%s3268_s3 + $0x8] sm:$0xff]  ;;  %v1142_v53 = vadd.f32 %v1140_v46, %v1136_v45  ;;  %v1146_v54 = vmul.f32 %v2950_v10, %v1145_v47  ;;  %v1338_v55 = vmul.f32 %v1336_v41, %v2932_v4 }
  0x88   : > { %2307 = vmatmul.mubr.msk.f32.vlgmr.msra.gmra.mrb[0].mxu0 %vm323_vm0, %v542_v17  ;;  %v740_v17 = vmul.f32 0.5, %v738_v52  ;;  %v1141_v52 = vmul.f32 %v2948_v8, %v1139_v40  ;;  %v1342_v56 = vmul.f32 %v2940_v6, %v1340_v42  ;;  %v1343_v57 = vadd.f32 %v1341_v49, %v1337_v48 }
  0x89   : > { %2313 = vmatprep.mubr.msk.f32.mxu0 %vm323_vm0, %v2985_v18  ;;  %v1347_v58 = vmul.f32 %v2946_v7, %v1346_v50  ;;  %v1352_v59 = vstv %s3051_s13  ;;  %v1147_v61 = vmul.f32 %v2952_v11, %v1145_v47  ;;  %v1148_v62 = vadd.f32 %v1146_v54, %v1142_v53  ;;  %s2204_s13 = sshll.u32 %s2783_s22, 12  ;;  %s1957_s22 = scalar_lea.sflag [#allocation4], %s2908_s25 }
  0x8a   : > { %v2565_v12 = vpop.eup %2564  ;;  %v1143_v60 = vadd.f32 %v1141_v52, %v1137_v51  ;;  %v1344_v63 = vadd.f32 %v1342_v56, %v1338_v55  ;;  %v1348_v0 = vmul.f32 %v2948_v8, %v1346_v50 }
  0x8b   : > { %v746_v19 = vadd.f32 1.0, %v2565_v12  ;;  %v1353_v12 = vmul.f32 %v2950_v10, %v1352_v59 }
  0x8d   : > { %v748_v27 = vmul.f32 %v746_v19, %v740_v17  ;;  %v1354_v17 = vmul.f32 %v2952_v11, %v1352_v59 }
  0x8e   : > { %v2567_v14 = vpop.eup %2566 }
  0x8f   : > { %v2569_v21 = vpop.eup %2568  ;;  %v747_v25 = vadd.f32 1.0, %v2567_v14 }
  0x90   : > { %v953_v30 = vadd.f32 1.0, %v2569_v21 }
  0x91   : > { %v2571_v28 = vpop.eup %2570  ;;  %v749_v31 = vmul.f32 %v747_v25, %v741_v24 }
  0x92   : > { %v954_v33 = vadd.f32 1.0, %v2571_v28  ;;  %v955_v34 = vmul.f32 %v953_v30, %v947_v29 }
  0x94   : > { %v956_v35 = vmul.f32 %v954_v33, %v948_v32 }
 0x156   : > { %v2291_v1 = vpop.f32.mrb[0].mxu1 }
 0x157   : > { %v396_v9 = vpop.f32.mrb[1].mxu1 }
 0x158   : > { %v2425_v13 = vpack.c.bf16 %v2291_v1, %v396_v9  ;;  %v1151_v1 = vstv %s2142_s17  ;;  %v1349_v9 = vadd.f32 %v1347_v58, %v1343_v57  ;;  %s1970_s17 = sshll.u32 %s3069_s15, 4  ;;  %s3217_s17 = int_to_ptr.vmem [resolvable:$true] %s1970_s17 }
 0x159   : > { %v1152_v14 = vadd.f32 %v1151_v1, %v1148_v62  ;;  %v1547_v62 = vstv %s2169_s16  ;;  %s2648_s16 = scalar_lea.vmem %s3217_s17, 4096 }
 0x15a   : > { %2426 = vmatprep.subr.bf16.mxu1 %v2425_v13  ;;  %v1355_v19 = vadd.f32 %v1353_v12, %v1349_v9  ;;  %v1750_v9 = vstv %s2183_s26  ;;  %v1754_v12 = vstv %s2184_s8  ;;  %p2649_p5 = scmp.ne.s32.totalorder %s3217_s17, %s2648_s16 }
 0x15b   : > { %v2308_v15 = vpop.f32.mrb[0].mxu0  ;;  %2428 = vmatpush3.bf16.msra.mxu1 %v2425_v13  ;;  %v1149_v13 = vadd.f32 %v1147_v61, %v1143_v60  ;;  %v1154_v45 = vmul.f32 0.5, %v1152_v14  ;;  %v1543_v61 = vstv %s2168_s12  ;;  %s3215_s12 = scalar_lea.hbm %s3270_s5, %s2204_s13 }
 0x15c   : > { %v615_v20 = vpop.f32.mrb[1].mxu0  ;;  %2438 = vmatprep.subr.bf16.mxu1 %v2922_v2  ;;  %p2650_p8 = pnand %p2649_p5, %p3290_p2 }
 0x15d   : > { %v2433_v22 = vpack.c.bf16 %v2308_v15, %v615_v20  ;;  %v1350_v15 = vadd.f32 %v1348_v0, %v1344_v63  ;;  %v1358_v20 = vstv %s2157_s14  ;;  %v1153_v21 = vadd.f32 %v1151_v1, %v1149_v13 }
 0x15e   : > { %2297 = vmatmul.mubr.msk.f32.vlgmr.msra.gmra.mrb[2].mxu1 %vm323_vm0, %v3013_v16  ;;  %v1359_v25 = vadd.f32 %v1358_v20, %v1355_v19  ;;  %v1544_v63 = vmul.f32 %v1543_v61, %v2930_v3  ;;  %v1548_v0 = vmul.f32 %v2938_v5, %v1547_v62  ;;  %v1553_v1 = vstv %s2170_s11  ;;  %p2651_p10 = pneg %p2650_p8  ;;  %s2729_s11 = smov [#allocation9]  }
 0x15f   : > { %2434 = vmatprep.subr.bf16.mxu0 %v2433_v22  ;;  %2440 = vmatpush3.bf16.msra.mxu1 %v2922_v2  ;;  %v1356_v24 = vadd.f32 %v1354_v17, %v1350_v15  ;;  %v1155_v50 = vmul.f32 0.5, %v1153_v21  ;;  %v1545_v13 = vmul.f32 %v1543_v61, %v2932_v4  ;;  %v1554_v17 = vmul.f32 %v2946_v7, %v1553_v1  ;;  %s2652_s26 = sshll.u32 %s2729_s11, 4  ;;  %s2653_s26 = int_to_ptr.vmem [resolvable:$false] %s2652_s26 }
 0x160   : > { %2436 = vmatpush3.bf16.msra.mxu0 %v2433_v22  ;;  %2299 = vmatprep.mubr.msk.f32.mxu1 %vm323_vm0, %v3019_v23  ;;  %v1156_v22 = vmul.f32 0.70710677, %v1152_v14  ;;  %v1361_v54 = vmul.f32 0.5, %v1359_v25  ;;  %v1549_v14 = vmul.f32 %v2940_v6, %v1547_v62  ;;  %v1550_v15 = vadd.f32 %v1548_v0, %v1544_v63  ;;  %s2654_s8 = scalar_lea.vmem %s2653_s26, 8192  ;;  %p2655_p4 = scmp.lt.s32.totalorder %s3217_s17, %s2653_s26 }
 0x161   : > { %2446 = vmatprep.subr.bf16.mxu0 %v2922_v2  ;;  %v1360_v29 = vadd.f32 %v1358_v20, %v1356_v24  ;;  %v1559_v19 = vstv %s2171_s9  ;;  %v1751_v20 = vmul.f32 %v1750_v9, %v2930_v3  ;;  %p2656_p12 = scmp.lt.s32.totalorder %s2654_s8, %s2648_s16 }
 0x162   : > { %2300 = vmatmul.mubr.msk.f32.gmra.mrb[4].mxu1 %vm323_vm0, %v3027_v26  ;;  %2572 = verf.f32 %v1156_v22  ;;  %v1760_v22 = vstv %s2185_s23  ;;  %v1551_v24 = vadd.f32 %v1549_v14, %v1545_v13  ;;  %v1561_v3 = vmul.f32 %v2952_v11, %v1559_v19 }
 0x163   : > { %2314 = vmatmul.mubr.msk.f32.vlgmr.msra.gmra.mrb[2].mxu0 %vm323_vm0, %v3013_v16  ;;  %2323 = vmatprep.mubr.msk.f32.mxu1 %vm323_vm0, %v748_v27  ;;  %v1157_v27 = vmul.f32 0.70710677, %v1153_v21  ;;  %v1364_v33 = vmul.f32 0.70710677, %v1360_v29  ;;  %v1362_v57 = vmul.f32 0.5, %v1360_v29  ;;  %v1755_v21 = vmul.f32 %v2938_v5, %v1754_v12  ;;  %p2657_p0 = por %p2656_p12, %p2655_p4 }
 0x164   : > { %2448 = vmatpush3.bf16.msra.mxu0 %v2922_v2  ;;  %2316 = vmatprep.mubr.msk.f32.mxu0 %vm323_vm0, %v3019_v23  ;;  %v1752_v29 = vmul.f32 %v1750_v9, %v2932_v4 }
 0x165   : > { %2574 = verf.f32 %v1157_v27  ;;  %v1556_v27 = vadd.f32 %v1554_v17, %v1550_v15  ;;  %p2658_p7 = pnand %p2657_p0, %p2651_p10 }
 0x166   : > { %2324 = vmatmul.mubr.msk.f32.vlgmr.msra.gmra.mrb[6].mxu1 %vm323_vm0, %v749_v31  ;;  %v1363_v31 = vmul.f32 0.70710677, %v1359_v25  ;;  %v1555_v25 = vmul.f32 %v2948_v8, %v1553_v1 }
 0x167   : > { %2317 = vmatmul.mubr.msk.f32.gmra.mrb[4].mxu0 %vm323_vm0, %v3027_v26  ;;  %2330 = vmatprep.mubr.msk.f32.mxu1 %vm323_vm0, %v2985_v18 }
 0x168   : > { %2340 = vmatprep.mubr.msk.f32.mxu0 %vm323_vm0, %v955_v34  ;;  %2576 = verf.f32 %v1363_v31  ;;  %v1757_v31 = vadd.f32 %v1755_v21, %v1751_v20 }
 0x169   : > { %2578 = verf.f32 %v1364_v33  ;;  %v1766_v33 = vstv %s3113_s28 }
 0x16b   : > { %2341 = vmatmul.mubr.msk.f32.vlgmr.msra.gmra.mrb[6].mxu0 %vm323_vm0, %v956_v35 }
 0x16c   : > { %2347 = vmatprep.mubr.msk.f32.mxu0 %vm323_vm0, %v2985_v18  ;;  %v2573_v40 = vpop.eup %2572 }
 0x16d   : > { %v1160_v46 = vadd.f32 1.0, %v2573_v40 }
 0x16f   : > { %v2575_v43 = vpop.eup %2574  ;;  %v1162_v52 = vmul.f32 %v1160_v46, %v1154_v45 }
 0x170   : > { %v1161_v51 = vadd.f32 1.0, %v2575_v43 }
 0x172   : > { %v2577_v48 = vpop.eup %2576  ;;  %v1163_v56 = vmul.f32 %v1161_v51, %v1155_v50 }
 0x173   : > { %v2579_v53 = vpop.eup %2578  ;;  %v1367_v55 = vadd.f32 1.0, %v2577_v48 }
 0x174   : > { %v1368_v58 = vadd.f32 1.0, %v2579_v53 }
 0x175   : > { %v1369_v59 = vmul.f32 %v1367_v55, %v1361_v54 }
 0x176   : > { %v1370_v60 = vmul.f32 %v1368_v58, %v1362_v57 }
 0x231   : > { %v2298_v28 = vpop.f32.mrb[2].mxu1 }
 0x232   : > { %504 = vst.msk [vmem:[%s3069_s15 + $0x8] sm:$0xff] %vm502_vm1, %v2298_v28  ;;  %v483_v30 = vpop.f32.mrb[3].mxu1  ;;  %v1560_v28 = vmul.f32 %v2950_v10, %v1559_v19 }
 0x233   : > { %503 = vst.msk [vmem:[%s3069_s15] sm:$0xff] %vm502_vm1, %v483_v30  ;;  %v1756_v30 = vmul.f32 %v2940_v6, %v1754_v12 }
 0x234   : > { %v1562_v5 = vadd.f32 %v1560_v28, %v1556_v27 }
 0x235   : > { %v2301_v32 = vpop.f32.mrb[4].mxu1 }
 0x236   : > { %v2315_v34 = vpop.f32.mrb[2].mxu0  ;;  %506 = vst.msk [vmem:[%s3069_s15 + $0x18] sm:$0xff] %vm502_vm1, %v2301_v32  ;;  %v493_v35 = vpop.f32.mrb[5].mxu1  ;;  %v1761_v32 = vmul.f32 %v2946_v7, %v1760_v22  ;;  %v1768_v7 = vmul.f32 %v2952_v11, %v1766_v33 }
 0x237   : > { %2105 = vst.msk [vmem:[%s3069_s15 + $0x28] sm:$0xff] %vm502_vm1, %v2315_v34  ;;  %v690_v36 = vpop.f32.mrb[3].mxu0  ;;  %505 = vst.msk [vmem:[%s3069_s15 + $0x10] sm:$0xff] %vm502_vm1, %v493_v35  ;;  %v1557_v34 = vadd.f32 %v1555_v25, %v1551_v24  ;;  %v1758_v35 = vadd.f32 %v1756_v30, %v1752_v29 }
 0x238   : > { %2104 = vst.msk [vmem:[%s3069_s15 + $0x20] sm:$0xff] %vm502_vm1, %v690_v36  ;;  %v1762_v36 = vmul.f32 %v2948_v8, %v1760_v22 }
 0x239   : > { %v2325_v37 = vpop.f32.mrb[6].mxu1  ;;  %v1563_v4 = vadd.f32 %v1561_v3, %v1557_v34 }
 0x23a   : > { %v2318_v38 = vpop.f32.mrb[4].mxu0  ;;  %v822_v39 = vpop.f32.mrb[7].mxu1  ;;  %v1764_v6 = vadd.f32 %v1762_v36, %v1758_v35 }
 0x23b   : > { %2107 = vst.msk [vmem:[%s3069_s15 + $0x38] sm:$0xff] %vm502_vm1, %v2318_v38  ;;  %v700_v41 = vpop.f32.mrb[5].mxu0  ;;  %v2441_v42 = vpack.c.bf16 %v2325_v37, %v822_v39  ;;  %v1565_v37 = vstv %s2172_s29  ;;  %v1763_v38 = vadd.f32 %v1761_v32, %v1757_v31  ;;  %v1767_v39 = vmul.f32 %v2950_v10, %v1766_v33 }
 0x23c   : > { %2106 = vst.msk [vmem:[%s3069_s15 + $0x30] sm:$0xff] %vm502_vm1, %v700_v41  ;;  %v1566_v40 = vadd.f32 %v1565_v37, %v1562_v5  ;;  %v1567_v43 = vadd.f32 %v1565_v37, %v1563_v4  ;;  %v1770_v45 = vadd.f32 %v1768_v7, %v1764_v6 }
 0x23d   : > { %2442 = vmatprep.subr.bf16.mxu1 %v2441_v42  ;;  %v1769_v41 = vadd.f32 %v1767_v39, %v1763_v38 }
 0x23e   : > { %v2342_v44 = vpop.f32.mrb[6].mxu0  ;;  %2444 = vmatpush3.bf16.msra.mxu1 %v2441_v42  ;;  %v1772_v42 = vstv %s2187_s10  ;;  %v1571_v8 = vmul.f32 0.70710677, %v1567_v43  ;;  %v1568_v62 = vmul.f32 0.5, %v1566_v40  ;;  %v1569_v12 = vmul.f32 0.5, %v1567_v43 }
 0x23f   : > { %v1029_v47 = vpop.f32.mrb[7].mxu0  ;;  %2454 = vmatprep.subr.bf16.mxu1 %v2922_v2  ;;  %v1773_v46 = vadd.f32 %v1772_v42, %v1769_v41  ;;  %v1774_v10 = vadd.f32 %v1772_v42, %v1770_v45 }
 0x240   : > { %v2449_v49 = vpack.c.bf16 %v2342_v44, %v1029_v47  ;;  %v1570_v44 = vmul.f32 0.70710677, %v1566_v40 }
 0x241   : > { %2331 = vmatmul.mubr.msk.f32.vlgmr.msra.gmra.mrb[8].mxu1 %vm323_vm0, %v3013_v16  ;;  %v1778_v50 = vmul.f32 0.70710677, %v1774_v10  ;;  %v1775_v17 = vmul.f32 0.5, %v1773_v46  ;;  %v1776_v21 = vmul.f32 0.5, %v1774_v10 }
 0x242   : > { %2450 = vmatprep.subr.bf16.mxu0 %v2449_v49  ;;  %2456 = vmatpush3.bf16.msra.mxu1 %v2922_v2  ;;  %2580 = verf.f32 %v1570_v44 }
 0x243   : > { %2452 = vmatpush3.bf16.msra.mxu0 %v2449_v49  ;;  %2333 = vmatprep.mubr.msk.f32.mxu1 %vm323_vm0, %v3019_v23  ;;  %v1777_v49 = vmul.f32 0.70710677, %v1773_v46  ;;  %2582 = verf.f32 %v1571_v8 }
 0x244   : > { %2462 = vmatprep.subr.bf16.mxu0 %v2922_v2 }
 0x245   : > { %2334 = vmatmul.mubr.msk.f32.gmra.mrb[10].mxu1 %vm323_vm0, %v3027_v26  ;;  %2584 = verf.f32 %v1777_v49 }
 0x246   : > { %2348 = vmatmul.mubr.msk.f32.vlgmr.msra.gmra.mrb[8].mxu0 %vm323_vm0, %v3013_v16  ;;  %2357 = vmatprep.mubr.msk.f32.mxu1 %vm323_vm0, %v1162_v52  ;;  %2586 = verf.f32 %v1778_v50 }
 0x247   : > { %2464 = vmatpush3.bf16.msra.mxu0 %v2922_v2  ;;  %2350 = vmatprep.mubr.msk.f32.mxu0 %vm323_vm0, %v3019_v23 }
 0x249   : > { %2358 = vmatmul.mubr.msk.f32.vlgmr.msra.gmra.mrb[12].mxu1 %vm323_vm0, %v1163_v56 }
 0x24a   : > { %2351 = vmatmul.mubr.msk.f32.gmra.mrb[10].mxu0 %vm323_vm0, %v3027_v26  ;;  %2364 = vmatprep.mubr.msk.f32.mxu1 %vm323_vm0, %v2985_v18 }
 0x24b   : > { %2374 = vmatprep.mubr.msk.f32.mxu0 %vm323_vm0, %v1369_v59 }
 0x24c   : > { %v2581_v57 = vpop.eup %2580 }
 0x24d   : > { %v1574_v63 = vadd.f32 1.0, %v2581_v57 }
 0x24e   : > { %2375 = vmatmul.mubr.msk.f32.vlgmr.msra.gmra.mrb[12].mxu0 %vm323_vm0, %v1370_v60  ;;  %v2583_v60 = vpop.eup %2582 }
 0x24f   : > { %2381 = vmatprep.mubr.msk.f32.mxu0 %vm323_vm0, %v2985_v18  ;;  %v2585_v1 = vpop.eup %2584  ;;  %v1575_v13 = vadd.f32 1.0, %v2583_v60  ;;  %v1576_v14 = vmul.f32 %v1574_v63, %v1568_v62 }
 0x250   : > { %v2587_v15 = vpop.eup %2586  ;;  %v1781_v19 = vadd.f32 1.0, %v2585_v1 }
 0x251   : > { %v1577_v20 = vmul.f32 %v1575_v13, %v1569_v12  ;;  %v1782_v22 = vadd.f32 1.0, %v2587_v15 }
 0x252   : > { %v1783_v24 = vmul.f32 %v1781_v19, %v1775_v17 }
 0x253   : > { %v1784_v25 = vmul.f32 %v1782_v22, %v1776_v21 }
 0x314   : > { %v2332_v47 = vpop.f32.mrb[8].mxu1 }
 0x315   : > { %2120 = vst.msk [vmem:[%s3069_s15 + $0x48] sm:$0xff] %vm502_vm1, %v2332_v47  ;;  %v897_v48 = vpop.f32.mrb[9].mxu1 }
 0x316   : > { %2119 = vst.msk [vmem:[%s3069_s15 + $0x40] sm:$0xff] %vm502_vm1, %v897_v48 }
 0x318   : > { %v2335_v11 = vpop.f32.mrb[10].mxu1 }
 0x319   : > { %v2349_v51 = vpop.f32.mrb[8].mxu0  ;;  %2122 = vst.msk [vmem:[%s3069_s15 + $0x58] sm:$0xff] %vm502_vm1, %v2335_v11  ;;  %v907_v52 = vpop.f32.mrb[11].mxu1 }
 0x31a   : > { %2135 = vst.msk [vmem:[%s3069_s15 + $0x68] sm:$0xff] %vm502_vm1, %v2349_v51  ;;  %v1104_v53 = vpop.f32.mrb[9].mxu0  ;;  %2121 = vst.msk [vmem:[%s3069_s15 + $0x50] sm:$0xff] %vm502_vm1, %v907_v52 }
 0x31b   : > { %2134 = vst.msk [vmem:[%s3069_s15 + $0x60] sm:$0xff] %vm502_vm1, %v1104_v53 }
 0x31c   : > { %v2359_v54 = vpop.f32.mrb[12].mxu1 }
 0x31d   : > { %v2352_v55 = vpop.f32.mrb[10].mxu0  ;;  %v1236_v56 = vpop.f32.mrb[13].mxu1 }
 0x31e   : > { %2137 = vst.msk [vmem:[%s3069_s15 + $0x78] sm:$0xff] %vm502_vm1, %v2352_v55  ;;  %v1114_v58 = vpop.f32.mrb[11].mxu0  ;;  %v2457_v59 = vpack.c.bf16 %v2359_v54, %v1236_v56 }
 0x31f   : > { %2136 = vst.msk [vmem:[%s3069_s15 + $0x70] sm:$0xff] %vm502_vm1, %v1114_v58 }
 0x320   : > { %2458 = vmatprep.subr.bf16.mxu1 %v2457_v59 }
 0x321   : > { %v2376_v61 = vpop.f32.mrb[12].mxu0  ;;  %2460 = vmatpush3.bf16.msra.mxu1 %v2457_v59 }
 0x322   : > { %v1443_v0 = vpop.f32.mrb[13].mxu0  ;;  %2470 = vmatprep.subr.bf16.mxu1 %v2922_v2 }
 0x323   : > { %v2465_v9 = vpack.c.bf16 %v2376_v61, %v1443_v0 }
 0x324   : > { %2365 = vmatmul.mubr.msk.f32.vlgmr.msra.gmra.mrb[14].mxu1 %vm323_vm0, %v3013_v16 }
 0x325   : > { %2466 = vmatprep.subr.bf16.mxu0 %v2465_v9  ;;  %2472 = vmatpush3.bf16.msra.mxu1 %v2922_v2 }
 0x326   : > { %2468 = vmatpush3.bf16.msra.mxu0 %v2465_v9  ;;  %2367 = vmatprep.mubr.msk.f32.mxu1 %vm323_vm0, %v3019_v23 }
 0x327   : > { %2478 = vmatprep.subr.bf16.mxu0 %v2922_v2 }
 0x328   : > { %2368 = vmatmul.mubr.msk.f32.gmra.mrb[16].mxu1 %vm323_vm0, %v3027_v26 }
 0x329   : > { %2382 = vmatmul.mubr.msk.f32.vlgmr.msra.gmra.mrb[14].mxu0 %vm323_vm0, %v3013_v16  ;;  %2391 = vmatprep.mubr.msk.f32.mxu1 %vm323_vm0, %v1576_v14 }
 0x32a   : > { %2480 = vmatpush3.bf16.msra.mxu0 %v2922_v2  ;;  %2384 = vmatprep.mubr.msk.f32.mxu0 %vm323_vm0, %v3019_v23 }
 0x32c   : > { %2392 = vmatmul.mubr.msk.f32.vlgmr.msra.gmra.mrb[18].mxu1 %vm323_vm0, %v1577_v20 }
 0x32d   : > { %2385 = vmatmul.mubr.msk.f32.gmra.mrb[16].mxu0 %vm323_vm0, %v3027_v26  ;;  %2398 = vmatprep.mubr.msk.f32.mxu1 %vm323_vm0, %v2985_v18 }
 0x32e   : > { %2408 = vmatprep.mubr.msk.f32.mxu0 %vm323_vm0, %v1783_v24 }
 0x331   : > { %2409 = vmatmul.mubr.msk.f32.vlgmr.msra.gmra.mrb[18].mxu0 %vm323_vm0, %v1784_v25 }
 0x332   : > { %2415 = vmatprep.mubr.msk.f32.mxu0 %vm323_vm0, %v2985_v18 }
 0x3f7   : > { %v2366_v2 = vpop.f32.mrb[14].mxu1 }
 0x3f8   : > { %2150 = vst.msk [vmem:[%s3069_s15 + $0x88] sm:$0xff] %vm502_vm1, %v2366_v2  ;;  %v1311_v27 = vpop.f32.mrb[15].mxu1 }
 0x3f9   : > { %2149 = vst.msk [vmem:[%s3069_s15 + $0x80] sm:$0xff] %vm502_vm1, %v1311_v27 }
 0x3fb   : > { %v2369_v28 = vpop.f32.mrb[16].mxu1 }
 0x3fc   : > { %v2383_v29 = vpop.f32.mrb[14].mxu0  ;;  %2152 = vst.msk [vmem:[%s3069_s15 + $0x98] sm:$0xff] %vm502_vm1, %v2369_v28  ;;  %v1321_v30 = vpop.f32.mrb[17].mxu1 }
 0x3fd   : > { %2165 = vst.msk [vmem:[%s3069_s15 + $0xa8] sm:$0xff] %vm502_vm1, %v2383_v29  ;;  %v1518_v31 = vpop.f32.mrb[15].mxu0  ;;  %2151 = vst.msk [vmem:[%s3069_s15 + $0x90] sm:$0xff] %vm502_vm1, %v1321_v30 }
 0x3fe   : > { %2164 = vst.msk [vmem:[%s3069_s15 + $0xa0] sm:$0xff] %vm502_vm1, %v1518_v31 }
 0x3ff   : > { %v2393_v18 = vpop.f32.mrb[18].mxu1 }
 0x400   : > { %v2386_v32 = vpop.f32.mrb[16].mxu0  ;;  %v1650_v33 = vpop.f32.mrb[19].mxu1 }
 0x401   : > { %2167 = vst.msk [vmem:[%s3069_s15 + $0xb8] sm:$0xff] %vm502_vm1, %v2386_v32  ;;  %v1528_v34 = vpop.f32.mrb[17].mxu0  ;;  %v2473_v3 = vpack.c.bf16 %v2393_v18, %v1650_v33 }
 0x402   : > { %2166 = vst.msk [vmem:[%s3069_s15 + $0xb0] sm:$0xff] %vm502_vm1, %v1528_v34 }
 0x403   : > { %2474 = vmatprep.subr.bf16.mxu1 %v2473_v3 }
 0x404   : > { %v2410_v5 = vpop.f32.mrb[18].mxu0  ;;  %2476 = vmatpush3.bf16.msra.mxu1 %v2473_v3 }
 0x405   : > { %v1857_v35 = vpop.f32.mrb[19].mxu0 }
 0x406   : > { %v2481_v36 = vpack.c.bf16 %v2410_v5, %v1857_v35 }
 0x407   : > { %2399 = vmatmul.mubr.msk.f32.vlgmr.msra.gmra.mrb[20].mxu1 %vm323_vm0, %v3013_v16 }
 0x408   : > { %2482 = vmatprep.subr.bf16.mxu0 %v2481_v36  ;;  %2401 = vmatprep.mubr.msk.f32.mxu1 %vm323_vm0, %v3019_v23 }
 0x409   : > { %2484 = vmatpush3.bf16.msra.mxu0 %v2481_v36 }
 0x40b   : > { %2402 = vmatmul.mubr.msk.f32.gmra.mrb[22].mxu1 %vm323_vm0, %v3027_v26 }
 0x40c   : > { %2416 = vmatmul.mubr.msk.f32.vlgmr.msra.gmra.mrb[20].mxu0 %vm323_vm0, %v3013_v16 }
 0x40d   : > { %2418 = vmatprep.mubr.msk.f32.mxu0 %vm323_vm0, %v3019_v23 }
 0x410   : > { %2419 = vmatmul.mubr.msk.f32.gmra.mrb[22].mxu0 %vm323_vm0, %v3027_v26 }
 0x4da   : > { %v2400_v37 = vpop.f32.mrb[20].mxu1 }
 0x4db   : > { %2180 = vst.msk [vmem:[%s3069_s15 + $0xc8] sm:$0xff] %vm502_vm1, %v2400_v37  ;;  %v1725_v38 = vpop.f32.mrb[21].mxu1 }
 0x4dc   : > { %2179 = vst.msk [vmem:[%s3069_s15 + $0xc0] sm:$0xff] %vm502_vm1, %v1725_v38 }
 0x4de   : > { %v2403_v39 = vpop.f32.mrb[22].mxu1 }
 0x4df   : > { %v2417_v4 = vpop.f32.mrb[20].mxu0  ;;  %2182 = vst.msk [vmem:[%s3069_s15 + $0xd8] sm:$0xff] %vm502_vm1, %v2403_v39  ;;  %v1735_v16 = vpop.f32.mrb[23].mxu1 }
 0x4e0   : > { %2195 = vst.msk [vmem:[%s3069_s15 + $0xe8] sm:$0xff] %vm502_vm1, %v2417_v4  ;;  %v1932_v23 = vpop.f32.mrb[21].mxu0  ;;  %2181 = vst.msk [vmem:[%s3069_s15 + $0xd0] sm:$0xff] %vm502_vm1, %v1735_v16 }
 0x4e1   : > { %2194 = vst.msk [vmem:[%s3069_s15 + $0xe0] sm:$0xff] %vm502_vm1, %v1932_v23 }
 0x4e3   : > { %v2420_v26 = vpop.f32.mrb[22].mxu0 }
 0x4e4   : > { %2197 = vst.msk [vmem:[%s3069_s15 + $0xf8] sm:$0xff] %vm502_vm1, %v2420_v26  ;;  %v1942_v40 = vpop.f32.mrb[23].mxu0 }
 0x4e5   : > { %2196 = vst.msk [vmem:[%s3069_s15 + $0xf0] sm:$0xff] %vm502_vm1, %v1942_v40 }
 0x4e6   : > { %2661 = shalt.err (!%p2658_p7)
}
 0x4e7   : > { %s2662_s15 = scalar_lea.hbm %s3215_s12, 4096  ;;  %s2666_s28 = scalar_lea.hbm %s3270_s5, 8192 }
 0x4e8   : > { %p2663_p11 = scmp.ne.s32.totalorder %s3215_s12, %s2662_s15  ;;  %p2667_p9 = scmp.lt.u32.totalorder %s3215_s12, %s3270_s5 }
 0x4e9   : > { %p2668_p1 = scmp.lt.u32.totalorder %s2666_s28, %s2662_s15  ;;  %p2670_p5 = scmp.lt.u32.totalorder %s2662_s15, %s3215_s12 }
 0x4ea   : > { %p2664_p13 = pnand %p2663_p11, %p3290_p2 }
 0x4eb   : > { %p2669_p6 = por %p2668_p1, %p2667_p9 }
 0x4ec   : > { %p2665_p3 = pneg %p2664_p13 }
 0x4ed   : > { %p2671_p8 = por %p2670_p5, %p2669_p6 }
 0x4ef   : > { %p2672_p10 = pnand %p2671_p8, %p2665_p3 }
 0x4f1   : > { %2675 = shalt.err (!%p2672_p10)
}
 0x4f2   : > { %s2730_s13 = smov 128   ;;  %s2731_s14 = smov 8  }
 0x4f3   : > { %2495 = dma.vmem_to_hbm [thread:$0]  (%p3290_p2), %s3217_s17, 4096, %s3215_s12, %s1957_s22, %s2730_s13, %s2730_s13, %s2731_s14  }
 0x4f4 PF: > { %s1985_s7 = sand.u32 1, %s2710_s18   ;;  %p3291_p4 = scmp.ne.s32.totalorder %s3279_s6, 0 }
 0x4f5   : > { %p3292_p12 = scmp.ge.s32.totalorder %s2722_s21, 2  ;;  %s1986_s16 = scalar_lea.sflag [#allocation4], %s1985_s7 }
 0x4f7   : > { %p2509_p0 = pnand %p3292_p12, %p3291_p4 }
 0x4f9   : > { %2705 = dma.done.wait (!%p2509_p0), %s1986_s16, 4096  }
 0x4fa   : > { %2707 = vsyncadd (!%p2509_p0), %s1986_s16, 4294963200  ;;  %p20_p7 = scmp.ge.s32.totalorder %s2787_s24, 4   ;;  %s3293_s18 = smov %s2714_s19 }
 0x4fb   : > { %s3294_s19 = smov %s2718_s20  ;;  %s3295_s20 = smov %s2799_s27 }
 0x4fc   : > { %s3296_s21 = smov %s2787_s24  ;;  %22 = sbr.rel (!%p20_p7) target bundleno = 7 (0x7), region = 104 }
 0x503   :  { %1991 = vsyncpa [#allocation3], 1 }
 0x504   :  { %1993 = vsyncpa [#allocation3 + $0x1], 1 }
 0x505   :  { %1994 = vsyncpa [#allocation4], 1 }
 0x506   :  { %1996 = vsyncpa [#allocation4 + $0x1], 1 }
 0x507   :  { %1997 = vsyncpa [#allocation5], 1 }
 0x508   :  { %1999 = vsyncpa [#allocation5 + $0x1], 1 }
 0x509   :  { %2000 = vsyncpa [#allocation7], 1 }

</bundles_post_ra>
